<compile_context>
chip_gen: v5e
topology: v5e:2x2
jax: 0.10.0
libtpu: 0.0.40
codegen_flags: <defaults>
</compile_context>

<pallas_src>
import functools

import jax
import jax.numpy as jnp
from jax import lax
from jax.experimental import pallas as pl
from jax.experimental.pallas import tpu as pltpu

EPS = 1e-5
LANE = 128


# ----------------------------------------------------------------------------
# Small helpers
# ----------------------------------------------------------------------------
def _round_up(x, m):
    return (x + m - 1) // m * m


@functools.lru_cache(maxsize=None)
def _vmem_limit_bytes():
    """Scoped-VMEM limit, derived from the device (v7x has 64 MiB VMEM)."""
    cap = 128 * 1024 * 1024
    try:
        cap = int(getattr(pltpu.get_tpu_info(), "vmem_capacity_bytes", cap))
    except Exception:   # defensive: never fail just because the query did
        pass
    return int(min(cap // 2, 64 * 1024 * 1024))


def _pick_tm(m_rows, bytes_per_row, resident_bytes, vmem_budget):
    """Largest M-tile whose double-buffered working set fits the VMEM budget."""
    mpad = _round_up(max(m_rows, 1), 8)
    if mpad <= 128:
        return mpad                      # single block == full dim (always legal)
    tm = 128
    for cand in (256, 512, 1024, 2048):
        if cand > mpad:
            break
        if 2 * cand * bytes_per_row + resident_bytes <= vmem_budget // 2:
            tm = cand
    return tm


def _pad_vec(v, cp):
    v = jnp.asarray(v, jnp.float32).reshape(-1)
    return jnp.pad(v, (0, cp - v.shape[0])).reshape(1, cp)


def _pad_cols(a, cp):
    return jnp.pad(a.astype(jnp.float32), ((0, 0), (0, cp - a.shape[1])))


# ----------------------------------------------------------------------------
# Pass 1: tiled matmul(s) + per-channel sum / sum-of-squares accumulation
# ----------------------------------------------------------------------------
def _make_conv_stats_kernel(bias_flags, tm, m_true, need_mask):
    n_mm = len(bias_flags)

    def kernel(*refs):
        idx = 0
        p_ref = refs[idx]; idx += 1                      # (TM, K) bf16 patches
        w_refs = refs[idx:idx + n_mm]; idx += n_mm       # (K, Cp) bf16, resident
        b_refs = []
        for flag in bias_flags:
            if flag:
                b_refs.append(refs[idx]); idx += 1       # (1, Cp) f32, resident
            else:
                b_refs.append(None)
        conv_refs = refs[idx:idx + n_mm]; idx += n_mm    # (TM, Cp) f32 outputs
        sum_refs = refs[idx:idx + n_mm]; idx += n_mm     # (1, Cp) f32 accumulators
        sq_refs = refs[idx:idx + n_mm]                   # (1, Cp) f32 accumulators

        step = pl.program_id(0)

        @pl.when(step == 0)
        def _init():
            for j in range(n_mm):
                sum_refs[j][...] = jnp.zeros_like(sum_refs[j])
                sq_refs[j][...] = jnp.zeros_like(sq_refs[j])

        patches = p_ref[...]
        if need_mask:
            row = step * tm + lax.broadcasted_iota(jnp.int32, (tm, 1), 0)
            valid = (row < m_true).astype(jnp.float32)

        for j in range(n_mm):
            conv = jnp.dot(patches, w_refs[j][...],
                           preferred_element_type=jnp.float32)
            if b_refs[j] is not None:
                conv = conv + b_refs[j][...]
            conv_refs[j][...] = conv
            cm = conv * valid if need_mask else conv
            sum_refs[j][...] += jnp.sum(cm, axis=0, keepdims=True)
            sq_refs[j][...] += jnp.sum(cm * conv, axis=0, keepdims=True)

    return kernel


def conv_stats_pallas(patches, weights, biases):
    """Tiled (patches @ w_j) + BN statistics.

    patches: (M, K); weights: list of (K, Cp); biases: list of (1, Cp) or None.
    Returns (convs [(M, Cp) f32], sums [(1, Cp) f32], sqs [(1, Cp) f32]).
    """
    m_true, k = patches.shape
    cp = weights[0].shape[1]
    n_mm = len(weights)

    vmem_limit = _vmem_limit_bytes()
    bytes_per_row = k * 2 + n_mm * cp * 4
    resident = n_mm * (k * cp * 2 + 3 * cp * 4)
    tm = _pick_tm(m_true, bytes_per_row, resident, vmem_limit)
    mpad = _round_up(m_true, tm)
    grid_m = mpad // tm

    p = patches.astype(jnp.bfloat16)
    if mpad > m_true:
        p = jnp.pad(p, ((0, mpad - m_true), (0, 0)))

    inputs = [p]
    in_specs = [pl.BlockSpec((tm, k), lambda i: (i, 0))]
    for w in weights:
        inputs.append(w.astype(jnp.bfloat16))
        in_specs.append(pl.BlockSpec((k, cp), lambda i: (0, 0)))
    bias_flags = []
    for b in biases:
        bias_flags.append(b is not None)
        if b is not None:
            inputs.append(b.reshape(1, cp).astype(jnp.float32))
            in_specs.append(pl.BlockSpec((1, cp), lambda i: (0, 0)))

    out_shape = ([jax.ShapeDtypeStruct((mpad, cp), jnp.float32)] * n_mm
                 + [jax.ShapeDtypeStruct((1, cp), jnp.float32)] * (2 * n_mm))
    out_specs = ([pl.BlockSpec((tm, cp), lambda i: (i, 0))] * n_mm
                 + [pl.BlockSpec((1, cp), lambda i: (0, 0))] * (2 * n_mm))

    kernel = _make_conv_stats_kernel(tuple(bias_flags), tm, m_true,
                                     mpad > m_true)
    outs = pl.pallas_call(
        kernel,
        grid=(grid_m,),
        in_specs=in_specs,
        out_specs=out_specs,
        out_shape=out_shape,
        compiler_params=pltpu.CompilerParams(
            # Stats accumulate across M tiles -> reduction axis is "arbitrary".
            dimension_semantics=("arbitrary",),
            vmem_limit_bytes=vmem_limit),
        cost_estimate=pl.CostEstimate(
            flops=2 * mpad * k * cp * n_mm,
            transcendentals=0,
            bytes_accessed=int(p.size * 2 + n_mm * k * cp * 2
                               + n_mm * mpad * cp * 4 + 2 * n_mm * cp * 4)),
    )(*inputs)

    convs = [o[:m_true] for o in outs[:n_mm]]
    sums = list(outs[n_mm:2 * n_mm])
    sqs = list(outs[2 * n_mm:])
    return convs, sums, sqs


# ----------------------------------------------------------------------------
# Pass 2: BN affine apply (+ fused shortcut affine + residual) (+ ReLU)
# ----------------------------------------------------------------------------
def _make_bn_apply_kernel(has_res, relu):
    def kernel(*refs):
        idx = 0
        x_ref = refs[idx]; idx += 1        # (TM, Cp) f32 raw conv
        sc_ref = refs[idx]; idx += 1       # (1, Cp) f32 scale
        sh_ref = refs[idx]; idx += 1       # (1, Cp) f32 shift
        if has_res:
            r_ref = refs[idx]; idx += 1    # (TM, Cp) f32 residual (pre-affine)
            rsc_ref = refs[idx]; idx += 1  # (1, Cp)
            rsh_ref = refs[idx]; idx += 1  # (1, Cp)
        o_ref = refs[idx]

        y = x_ref[...] * sc_ref[...] + sh_ref[...]
        if has_res:
            y = y + (r_ref[...] * rsc_ref[...] + rsh_ref[...])
        if relu:
            y = jnp.maximum(y, 0.0)
        o_ref[...] = y.astype(o_ref.dtype)

    return kernel


def bn_apply_pallas(conv, scale, shift, residual=None, res_scale=None,
                    res_shift=None, relu=False, out_dtype=jnp.float32):
    m_true, cp = conv.shape
    has_res = residual is not None

    vmem_limit = _vmem_limit_bytes()
    out_isize = jnp.dtype(out_dtype).itemsize
    bytes_per_row = cp * 4 * (2 if has_res else 1) + cp * out_isize
    tm = _pick_tm(m_true, bytes_per_row, 8 * cp * 4, vmem_limit)
    mpad = _round_up(m_true, tm)
    grid_m = mpad // tm

    def padrows(a):
        return jnp.pad(a, ((0, mpad - m_true), (0, 0))) if mpad > m_true else a

    inputs = [padrows(conv), scale, shift]
    in_specs = [pl.BlockSpec((tm, cp), lambda i: (i, 0)),
                pl.BlockSpec((1, cp), lambda i: (0, 0)),
                pl.BlockSpec((1, cp), lambda i: (0, 0))]
    if has_res:
        inputs += [padrows(residual), res_scale, res_shift]
        in_specs += [pl.BlockSpec((tm, cp), lambda i: (i, 0)),
                     pl.BlockSpec((1, cp), lambda i: (0, 0)),
                     pl.BlockSpec((1, cp), lambda i: (0, 0))]

    bytes_accessed = int(sum(a.size * a.dtype.itemsize for a in inputs)
                         + mpad * cp * out_isize)
    out = pl.pallas_call(
        _make_bn_apply_kernel(has_res, relu),
        grid=(grid_m,),
        in_specs=in_specs,
        out_specs=pl.BlockSpec((tm, cp), lambda i: (i, 0)),
        out_shape=jax.ShapeDtypeStruct((mpad, cp), out_dtype),
        compiler_params=pltpu.CompilerParams(
            dimension_semantics=("parallel",),
            vmem_limit_bytes=vmem_limit),
        cost_estimate=pl.CostEstimate(
            flops=mpad * cp * (5 if has_res else 3),
            transcendentals=0,
            bytes_accessed=bytes_accessed),
    )(*inputs)
    return out[:m_true]


# ----------------------------------------------------------------------------
# Glue: im2col, weight reshaping, BN scale/shift (plain JAX)
# ----------------------------------------------------------------------------
def im2col(x_nhwc, stride):
    """x: (N, H, W, C) -> patches (N*Ho*Wo, 9*C); 3x3 kernel, pad=1."""
    n, h, w, c = x_nhwc.shape
    xp = jnp.pad(x_nhwc, ((0, 0), (1, 1), (1, 1), (0, 0)))
    ho = (h + 2 - 3) // stride + 1
    wo = (w + 2 - 3) // stride + 1
    cols = []
    for dy in range(3):
        for dx in range(3):
            cols.append(xp[:, dy:dy + stride * ho:stride,
                           dx:dx + stride * wo:stride, :])
    patches = jnp.stack(cols, axis=3)            # (N, Ho, Wo, 9, C)
    return patches.reshape(n * ho * wo, 9 * c), ho, wo


def torch_weight_to_mat(w_oihw, cp):
    """(Cout, Cin, 3, 3) -> (9*Cin, Cp) bf16, Cout zero-padded to 128 lanes."""
    cout = w_oihw.shape[0]
    w = jnp.transpose(w_oihw, (2, 3, 1, 0)).reshape(-1, cout)
    if cp > cout:
        w = jnp.pad(w, ((0, 0), (0, cp - cout)))
    return w.astype(jnp.bfloat16)


def _bn_scale_shift(ch_sum, ch_sq, gamma, beta, m_true):
    """Training-mode BN folded into y = x*scale + shift (all (1, Cp), f32)."""
    mean = ch_sum / m_true
    var = jnp.maximum(ch_sq / m_true - mean * mean, 0.0)   # biased variance
    scale = gamma * lax.rsqrt(var + EPS)
    shift = beta - mean * scale
    return scale, shift


# ----------------------------------------------------------------------------
# Basicblock forward (Pallas-backed)
# ----------------------------------------------------------------------------
def basicblock_forward(x_nchw, params, stride):
    x = jnp.transpose(x_nchw, (0, 2, 3, 1)).astype(jnp.float32)  # NCHW -> NHWC
    n, h, w, cin = x.shape
    planes = params["w1"].shape[0]
    cp = _round_up(planes, LANE)
    has_sc_conv = (stride != 1) or (cin != planes)

    # ---- stage 1: conv1 (and shortcut conv) share one bf16 im2col matrix ----
    # TODO(synk): replace the materialized im2col with in-kernel shifted
    # matmuls over an NHWC halo block to cut the 9x activation HBM traffic.
    p1, ho, wo = im2col(x.astype(jnp.bfloat16), stride)
    m1 = n * ho * wo

    weights = [torch_weight_to_mat(params["w1"], cp)]
    biases = [None]
    if has_sc_conv:
        weights.append(torch_weight_to_mat(params["ws"], cp))
        biases.append(_pad_vec(params["biass"], cp))
    convs, sums, sqs = conv_stats_pallas(p1, weights, biases)

    sc1, sh1 = _bn_scale_shift(sums[0], sqs[0],
                               _pad_vec(params["g1"], cp),
                               _pad_vec(params["b1"], cp), m1)
    out1 = bn_apply_pallas(convs[0], sc1, sh1, relu=True,
                           out_dtype=jnp.bfloat16)               # (m1, cp) bf16

    if has_sc_conv:
        res = convs[1]                                           # raw conv, f32
        rsc, rsh = _bn_scale_shift(sums[1], sqs[1],
                                   _pad_vec(params["gs"], cp),
                                   _pad_vec(params["bs"], cp), m1)
    else:
        res = _pad_cols(x.reshape(n * h * w, cin), cp)           # identity
        rsc = jnp.ones((1, cp), jnp.float32)
        rsh = jnp.zeros((1, cp), jnp.float32)

    # ---- stage 2: conv2 + BN + shortcut-BN + residual add + ReLU (fused) ----
    out1_img = out1[:, :planes].reshape(n, ho, wo, planes)
    p2, _, _ = im2col(out1_img, 1)
    convs2, sums2, sqs2 = conv_stats_pallas(
        p2, [torch_weight_to_mat(params["w2"], cp)], [None])
    sc2, sh2 = _bn_scale_shift(sums2[0], sqs2[0],
                               _pad_vec(params["g2"], cp),
                               _pad_vec(params["b2"], cp), m1)
    out = bn_apply_pallas(convs2[0], sc2, sh2,
                          residual=res, res_scale=rsc, res_shift=rsh,
                          relu=True, out_dtype=jnp.float32)      # (m1, cp)
    out = out[:, :planes].reshape(n, ho, wo, planes)
    return jnp.transpose(out, (0, 3, 1, 2))                      # NHWC -> NCHW


# ----------------------------------------------------------------------------
# Deterministic synthetic parameters
# ----------------------------------------------------------------------------
def init_params(key, in_planes, planes, stride):
    k1, k2, k3, kb = jax.random.split(key, 4)
    params = {
        "w1": jax.random.normal(k1, (planes, in_planes, 3, 3), jnp.float32) * 0.1,
        "g1": jnp.ones((planes,), jnp.float32),
        "b1": jnp.zeros((planes,), jnp.float32),
        "w2": jax.random.normal(k2, (planes, planes, 3, 3), jnp.float32) * 0.1,
        "g2": jnp.ones((planes,), jnp.float32),
        "b2": jnp.zeros((planes,), jnp.float32),
    }
    if stride != 1 or in_planes != planes:
        params["ws"] = jax.random.normal(
            k3, (planes, in_planes, 3, 3), jnp.float32) * 0.1
        params["biass"] = jax.random.normal(kb, (planes,), jnp.float32) * 0.1
        params["gs"] = jnp.ones((planes,), jnp.float32)
        params["bs"] = jnp.zeros((planes,), jnp.float32)
    return params


# ----------------------------------------------------------------------------
# Pure-JAX reference (same bf16 matmul precision / bf16 inter-layer storage)
# ----------------------------------------------------------------------------
def reference_forward(x_nchw, params, stride):
    def conv(x, w, s, bias=None):
        out = lax.conv_general_dilated(
            x.astype(jnp.bfloat16), w.astype(jnp.bfloat16),
            window_strides=(s, s), padding=((1, 1), (1, 1)),
            dimension_numbers=("NCHW", "OIHW", "NCHW"),
            preferred_element_type=jnp.float32)
        if bias is not None:
            out = out + bias[None, :, None, None]
        return out

    def bn(x, g, b):
        mean = jnp.mean(x, axis=(0, 2, 3), keepdims=True)
        var = jnp.mean((x - mean) ** 2, axis=(0, 2, 3), keepdims=True)
        return ((x - mean) * lax.rsqrt(var + EPS)
                * g[None, :, None, None] + b[None, :, None, None])

    out1 = jax.nn.relu(bn(conv(x_nchw, params["w1"], stride),
                          params["g1"], params["b1"]))
    out1 = out1.astype(jnp.bfloat16).astype(jnp.float32)   # match bf16 storage
    out = bn(conv(out1, params["w2"], 1), params["g2"], params["b2"])
    if "ws" in params:
        sc = bn(conv(x_nchw, params["ws"], stride, params["biass"]),
                params["gs"], params["bs"])
    else:
        sc = x_nchw
    return jax.nn.relu(out + sc)


if __name__ == "__main__":
    key = jax.random.PRNGKey(0)
    fwd = jax.jit(basicblock_forward, static_argnums=(2,))

    configs = [
        ("downsample", 4, 8, 2),   # conv shortcut path (stride 2, 4 -> 8)
        ("identity", 8, 8, 1),     # identity shortcut path
    ]
    for name, in_planes, planes, stride in configs:
        key, kx, kp = jax.random.split(key, 3)
        x = jax.random.normal(kx, (2, in_planes, 16, 16), jnp.float32)
        params = init_params(kp, in_planes, planes, stride)

        out = jax.block_until_ready(fwd(x, params, stride))
        ref = reference_forward(x, params, stride)

        hw = 16 // stride
        assert out.shape == ref.shape == (2, planes, hw, hw)
        err = float(jnp.max(jnp.abs(out - ref)))
        assert jnp.allclose(out, ref, atol=2e-3, rtol=2e-3), \
            f"{name}: max abs err = {err}"
    print("KERNEL_OK")
</pallas_src>

<mosaic_0001>
module attributes {stable_mosaic.version = 11 : i64} {
  func.func @kernel(%arg0: i32, %arg1: memref<128x36xbf16, #tpu.memory_space<vmem>>, %arg2: memref<36x128xbf16, #tpu.memory_space<vmem>>, %arg3: memref<36x128xbf16, #tpu.memory_space<vmem>>, %arg4: memref<1x128xf32, #tpu.memory_space<vmem>>, %arg5: memref<128x128xf32, #tpu.memory_space<vmem>>, %arg6: memref<128x128xf32, #tpu.memory_space<vmem>>, %arg7: memref<1x128xf32, #tpu.memory_space<vmem>>, %arg8: memref<1x128xf32, #tpu.memory_space<vmem>>, %arg9: memref<1x128xf32, #tpu.memory_space<vmem>>, %arg10: memref<1x128xf32, #tpu.memory_space<vmem>>) attributes {dimension_semantics = [#tpu.dimension_semantics<arbitrary>], iteration_bounds = array<i64: 1>, scalar_prefetch = 0 : i64, scratch_operands = 0 : i64, tpu.core_type = #tpu.core_type<tc>, window_params = [{transform_indices = @transform_0, window_bounds = array<i64: 128, 36>}, {pipeline_mode = #tpu.pipeline_mode<synchronous>, transform_indices = @transform_1, window_bounds = array<i64: 36, 128>}, {pipeline_mode = #tpu.pipeline_mode<synchronous>, transform_indices = @transform_2, window_bounds = array<i64: 36, 128>}, {pipeline_mode = #tpu.pipeline_mode<synchronous>, transform_indices = @transform_3, window_bounds = array<i64: 1, 128>}, {transform_indices = @transform_4, window_bounds = array<i64: 128, 128>}, {transform_indices = @transform_5, window_bounds = array<i64: 128, 128>}, {pipeline_mode = #tpu.pipeline_mode<synchronous>, transform_indices = @transform_6, window_bounds = array<i64: 1, 128>}, {pipeline_mode = #tpu.pipeline_mode<synchronous>, transform_indices = @transform_7, window_bounds = array<i64: 1, 128>}, {pipeline_mode = #tpu.pipeline_mode<synchronous>, transform_indices = @transform_8, window_bounds = array<i64: 1, 128>}, {pipeline_mode = #tpu.pipeline_mode<synchronous>, transform_indices = @transform_9, window_bounds = array<i64: 1, 128>}]} {
    %c0_i32 = arith.constant 0 : i32
    %0 = arith.cmpi eq, %arg0, %c0_i32 : i32
    %1 = arith.extui %0 : i1 to i32
    %c0_i32_0 = arith.constant 0 : i32
    %2 = arith.cmpi ne, %1, %c0_i32_0 : i32
    scf.if %2 {
      %cst_33 = arith.constant 0.000000e+00 : f32
      %35 = vector.broadcast %cst_33 : f32 to vector<1x128xf32>
      %c0_34 = arith.constant 0 : index
      %c0_35 = arith.constant 0 : index
      %36 = vector.load %arg7[%c0_34, %c0_35] : memref<1x128xf32, #tpu.memory_space<vmem>>, vector<1x128xf32>
      tpu.vector_store %arg7[%c0_34, %c0_35], %35 {strides = array<i32>} : memref<1x128xf32, #tpu.memory_space<vmem>>, vector<1x128xf32>,
      %cst_36 = arith.constant 0.000000e+00 : f32
      %37 = vector.broadcast %cst_36 : f32 to vector<1x128xf32>
      %c0_37 = arith.constant 0 : index
      %c0_38 = arith.constant 0 : index
      %38 = vector.load %arg9[%c0_37, %c0_38] : memref<1x128xf32, #tpu.memory_space<vmem>>, vector<1x128xf32>
      tpu.vector_store %arg9[%c0_37, %c0_38], %37 {strides = array<i32>} : memref<1x128xf32, #tpu.memory_space<vmem>>, vector<1x128xf32>,
      %cst_39 = arith.constant 0.000000e+00 : f32
      %39 = vector.broadcast %cst_39 : f32 to vector<1x128xf32>
      %c0_40 = arith.constant 0 : index
      %c0_41 = arith.constant 0 : index
      %40 = vector.load %arg8[%c0_40, %c0_41] : memref<1x128xf32, #tpu.memory_space<vmem>>, vector<1x128xf32>
      tpu.vector_store %arg8[%c0_40, %c0_41], %39 {strides = array<i32>} : memref<1x128xf32, #tpu.memory_space<vmem>>, vector<1x128xf32>,
      %cst_42 = arith.constant 0.000000e+00 : f32
      %41 = vector.broadcast %cst_42 : f32 to vector<1x128xf32>
      %c0_43 = arith.constant 0 : index
      %c0_44 = arith.constant 0 : index
      %42 = vector.load %arg10[%c0_43, %c0_44] : memref<1x128xf32, #tpu.memory_space<vmem>>, vector<1x128xf32>
      tpu.vector_store %arg10[%c0_43, %c0_44], %41 {strides = array<i32>} : memref<1x128xf32, #tpu.memory_space<vmem>>, vector<1x128xf32>,
    } else {
    }
    %c0 = arith.constant 0 : index
    %c0_1 = arith.constant 0 : index
    %3 = vector.load %arg1[%c0, %c0_1] : memref<128x36xbf16, #tpu.memory_space<vmem>>, vector<128x36xbf16>
    %c0_2 = arith.constant 0 : index
    %c0_3 = arith.constant 0 : index
    %4 = vector.load %arg2[%c0_2, %c0_3] : memref<36x128xbf16, #tpu.memory_space<vmem>>, vector<36x128xbf16>
    %cst = arith.constant dense<0.000000e+00> : vector<128x128xf32>
    %5 = tpu.matmul %3, %4, %cst {dimension_numbers = #tpu.dot_dimension_numbers<[1], [0], [0], [1], [0, 0, 1, 1], [], []>} : vector<128x36xbf16>, vector<36x128xbf16>, vector<128x128xf32> -> vector<128x128xf32>
    %c0_4 = arith.constant 0 : index
    %c0_5 = arith.constant 0 : index
    %6 = vector.load %arg5[%c0_4, %c0_5] : memref<128x128xf32, #tpu.memory_space<vmem>>, vector<128x128xf32>
    tpu.vector_store %arg5[%c0_4, %c0_5], %5 {strides = array<i32>} : memref<128x128xf32, #tpu.memory_space<vmem>>, vector<128x128xf32>,
    %c0_6 = arith.constant 0 : index
    %c0_7 = arith.constant 0 : index
    %7 = vector.load %arg7[%c0_6, %c0_7] : memref<1x128xf32, #tpu.memory_space<vmem>>, vector<1x128xf32>
    %cst_8 = arith.constant dense<0.000000e+00> : vector<128xf32>
    %8 = vector.multi_reduction <add>, %5, %cst_8 [0] : vector<128x128xf32> to vector<128xf32>
    %9 = vector.shape_cast %8 : vector<128xf32> to vector<1x128xf32>
    %10 = arith.addf %7, %9 : vector<1x128xf32>
    %c0_9 = arith.constant 0 : index
    %c0_10 = arith.constant 0 : index
    %11 = vector.load %arg7[%c0_9, %c0_10] : memref<1x128xf32, #tpu.memory_space<vmem>>, vector<1x128xf32>
    tpu.vector_store %arg7[%c0_9, %c0_10], %10 {strides = array<i32>} : memref<1x128xf32, #tpu.memory_space<vmem>>, vector<1x128xf32>,
    %c0_11 = arith.constant 0 : index
    %c0_12 = arith.constant 0 : index
    %12 = vector.load %arg9[%c0_11, %c0_12] : memref<1x128xf32, #tpu.memory_space<vmem>>, vector<1x128xf32>
    %13 = arith.mulf %5, %5 : vector<128x128xf32>
    %cst_13 = arith.constant dense<0.000000e+00> : vector<128xf32>
    %14 = vector.multi_reduction <add>, %13, %cst_13 [0] : vector<128x128xf32> to vector<128xf32>
    %15 = vector.shape_cast %14 : vector<128xf32> to vector<1x128xf32>
    %16 = arith.addf %12, %15 : vector<1x128xf32>
    %c0_14 = arith.constant 0 : index
    %c0_15 = arith.constant 0 : index
    %17 = vector.load %arg9[%c0_14, %c0_15] : memref<1x128xf32, #tpu.memory_space<vmem>>, vector<1x128xf32>
    tpu.vector_store %arg9[%c0_14, %c0_15], %16 {strides = array<i32>} : memref<1x128xf32, #tpu.memory_space<vmem>>, vector<1x128xf32>,
    %c0_16 = arith.constant 0 : index
    %c0_17 = arith.constant 0 : index
    %18 = vector.load %arg3[%c0_16, %c0_17] : memref<36x128xbf16, #tpu.memory_space<vmem>>, vector<36x128xbf16>
    %cst_18 = arith.constant dense<0.000000e+00> : vector<128x128xf32>
    %19 = tpu.matmul %3, %18, %cst_18 {dimension_numbers = #tpu.dot_dimension_numbers<[1], [0], [0], [1], [0, 0, 1, 1], [], []>} : vector<128x36xbf16>, vector<36x128xbf16>, vector<128x128xf32> -> vector<128x128xf32>
    %c0_19 = arith.constant 0 : index
    %c0_20 = arith.constant 0 : index
    %20 = vector.load %arg4[%c0_19, %c0_20] : memref<1x128xf32, #tpu.memory_space<vmem>>, vector<1x128xf32>
    %21 = vector.broadcast %20 : vector<1x128xf32> to vector<128x128xf32>
    %22 = arith.addf %19, %21 : vector<128x128xf32>
    %c0_21 = arith.constant 0 : index
    %c0_22 = arith.constant 0 : index
    %23 = vector.load %arg6[%c0_21, %c0_22] : memref<128x128xf32, #tpu.memory_space<vmem>>, vector<128x128xf32>
    tpu.vector_store %arg6[%c0_21, %c0_22], %22 {strides = array<i32>} : memref<128x128xf32, #tpu.memory_space<vmem>>, vector<128x128xf32>,
    %c0_23 = arith.constant 0 : index
    %c0_24 = arith.constant 0 : index
    %24 = vector.load %arg8[%c0_23, %c0_24] : memref<1x128xf32, #tpu.memory_space<vmem>>, vector<1x128xf32>
    %cst_25 = arith.constant dense<0.000000e+00> : vector<128xf32>
    %25 = vector.multi_reduction <add>, %22, %cst_25 [0] : vector<128x128xf32> to vector<128xf32>
    %26 = vector.shape_cast %25 : vector<128xf32> to vector<1x128xf32>
    %27 = arith.addf %24, %26 : vector<1x128xf32>
    %c0_26 = arith.constant 0 : index
    %c0_27 = arith.constant 0 : index
    %28 = vector.load %arg8[%c0_26, %c0_27] : memref<1x128xf32, #tpu.memory_space<vmem>>, vector<1x128xf32>
    tpu.vector_store %arg8[%c0_26, %c0_27], %27 {strides = array<i32>} : memref<1x128xf32, #tpu.memory_space<vmem>>, vector<1x128xf32>,
    %c0_28 = arith.constant 0 : index
    %c0_29 = arith.constant 0 : index
    %29 = vector.load %arg10[%c0_28, %c0_29] : memref<1x128xf32, #tpu.memory_space<vmem>>, vector<1x128xf32>
    %30 = arith.mulf %22, %22 : vector<128x128xf32>
    %cst_30 = arith.constant dense<0.000000e+00> : vector<128xf32>
    %31 = vector.multi_reduction <add>, %30, %cst_30 [0] : vector<128x128xf32> to vector<128xf32>
    %32 = vector.shape_cast %31 : vector<128xf32> to vector<1x128xf32>
    %33 = arith.addf %29, %32 : vector<1x128xf32>
    %c0_31 = arith.constant 0 : index
    %c0_32 = arith.constant 0 : index
    %34 = vector.load %arg10[%c0_31, %c0_32] : memref<1x128xf32, #tpu.memory_space<vmem>>, vector<1x128xf32>
    tpu.vector_store %arg10[%c0_31, %c0_32], %33 {strides = array<i32>} : memref<1x128xf32, #tpu.memory_space<vmem>>, vector<1x128xf32>,
    return
  }
  func.func @transform_0(%arg0: i32) -> (i32, i32) {
    %c0_i32 = arith.constant 0 : i32
    %c0_i32_0 = arith.constant 0 : i32
    return %arg0, %c0_i32 : i32, i32
  }
  func.func @transform_1(%arg0: i32) -> (i32, i32) {
    %c0_i32 = arith.constant 0 : i32
    %c0_i32_0 = arith.constant 0 : i32
    %c0_i32_1 = arith.constant 0 : i32
    return %c0_i32, %c0_i32_0 : i32, i32
  }
  func.func @transform_2(%arg0: i32) -> (i32, i32) {
    %c0_i32 = arith.constant 0 : i32
    %c0_i32_0 = arith.constant 0 : i32
    %c0_i32_1 = arith.constant 0 : i32
    return %c0_i32, %c0_i32_0 : i32, i32
  }
  func.func @transform_3(%arg0: i32) -> (i32, i32) {
    %c0_i32 = arith.constant 0 : i32
    %c0_i32_0 = arith.constant 0 : i32
    %c0_i32_1 = arith.constant 0 : i32
    return %c0_i32, %c0_i32_0 : i32, i32
  }
  func.func @transform_4(%arg0: i32) -> (i32, i32) {
    %c0_i32 = arith.constant 0 : i32
    %c0_i32_0 = arith.constant 0 : i32
    return %arg0, %c0_i32 : i32, i32
  }
  func.func @transform_5(%arg0: i32) -> (i32, i32) {
    %c0_i32 = arith.constant 0 : i32
    %c0_i32_0 = arith.constant 0 : i32
    return %arg0, %c0_i32 : i32, i32
  }
  func.func @transform_6(%arg0: i32) -> (i32, i32) {
    %c0_i32 = arith.constant 0 : i32
    %c0_i32_0 = arith.constant 0 : i32
    %c0_i32_1 = arith.constant 0 : i32
    return %c0_i32, %c0_i32_0 : i32, i32
  }
  func.func @transform_7(%arg0: i32) -> (i32, i32) {
    %c0_i32 = arith.constant 0 : i32
    %c0_i32_0 = arith.constant 0 : i32
    %c0_i32_1 = arith.constant 0 : i32
    return %c0_i32, %c0_i32_0 : i32, i32
  }
  func.func @transform_8(%arg0: i32) -> (i32, i32) {
    %c0_i32 = arith.constant 0 : i32
    %c0_i32_0 = arith.constant 0 : i32
    %c0_i32_1 = arith.constant 0 : i32
    return %c0_i32, %c0_i32_0 : i32, i32
  }
  func.func @transform_9(%arg0: i32) -> (i32, i32) {
    %c0_i32 = arith.constant 0 : i32
    %c0_i32_0 = arith.constant 0 : i32
    %c0_i32_1 = arith.constant 0 : i32
    return %c0_i32, %c0_i32_0 : i32, i32
  }
}

module attributes {stable_mosaic.version = 11 : i64} {
  func.func @kernel(%arg0: i32, %arg1: memref<128x128xf32, #tpu.memory_space<vmem>>, %arg2: memref<1x128xf32, #tpu.memory_space<vmem>>, %arg3: memref<1x128xf32, #tpu.memory_space<vmem>>, %arg4: memref<128x128xbf16, #tpu.memory_space<vmem>>) attributes {dimension_semantics = [#tpu.dimension_semantics<parallel>], iteration_bounds = array<i64: 1>, scalar_prefetch = 0 : i64, scratch_operands = 0 : i64, tpu.core_type = #tpu.core_type<tc>, window_params = [{transform_indices = @transform_0, window_bounds = array<i64: 128, 128>}, {pipeline_mode = #tpu.pipeline_mode<synchronous>, transform_indices = @transform_1, window_bounds = array<i64: 1, 128>}, {pipeline_mode = #tpu.pipeline_mode<synchronous>, transform_indices = @transform_2, window_bounds = array<i64: 1, 128>}, {transform_indices = @transform_3, window_bounds = array<i64: 128, 128>}]} {
    %c0 = arith.constant 0 : index
    %c0_0 = arith.constant 0 : index
    %0 = vector.load %arg1[%c0, %c0_0] : memref<128x128xf32, #tpu.memory_space<vmem>>, vector<128x128xf32>
    %c0_1 = arith.constant 0 : index
    %c0_2 = arith.constant 0 : index
    %1 = vector.load %arg2[%c0_1, %c0_2] : memref<1x128xf32, #tpu.memory_space<vmem>>, vector<1x128xf32>
    %2 = vector.broadcast %1 : vector<1x128xf32> to vector<128x128xf32>
    %3 = arith.mulf %0, %2 : vector<128x128xf32>
    %c0_3 = arith.constant 0 : index
    %c0_4 = arith.constant 0 : index
    %4 = vector.load %arg3[%c0_3, %c0_4] : memref<1x128xf32, #tpu.memory_space<vmem>>, vector<1x128xf32>
    %5 = vector.broadcast %4 : vector<1x128xf32> to vector<128x128xf32>
    %6 = arith.addf %3, %5 : vector<128x128xf32>
    %cst = arith.constant 0.000000e+00 : f32
    %7 = vector.broadcast %cst : f32 to vector<128x128xf32>
    %8 = arith.maximumf %6, %7 : vector<128x128xf32>
    %9 = arith.truncf %8 : vector<128x128xf32> to vector<128x128xbf16>
    %c0_5 = arith.constant 0 : index
    %c0_6 = arith.constant 0 : index
    %10 = vector.load %arg4[%c0_5, %c0_6] : memref<128x128xbf16, #tpu.memory_space<vmem>>, vector<128x128xbf16>
    tpu.vector_store %arg4[%c0_5, %c0_6], %9 {strides = array<i32>} : memref<128x128xbf16, #tpu.memory_space<vmem>>, vector<128x128xbf16>,
    return
  }
  func.func @transform_0(%arg0: i32) -> (i32, i32) {
    %c0_i32 = arith.constant 0 : i32
    %c0_i32_0 = arith.constant 0 : i32
    return %arg0, %c0_i32 : i32, i32
  }
  func.func @transform_1(%arg0: i32) -> (i32, i32) {
    %c0_i32 = arith.constant 0 : i32
    %c0_i32_0 = arith.constant 0 : i32
    %c0_i32_1 = arith.constant 0 : i32
    return %c0_i32, %c0_i32_0 : i32, i32
  }
  func.func @transform_2(%arg0: i32) -> (i32, i32) {
    %c0_i32 = arith.constant 0 : i32
    %c0_i32_0 = arith.constant 0 : i32
    %c0_i32_1 = arith.constant 0 : i32
    return %c0_i32, %c0_i32_0 : i32, i32
  }
  func.func @transform_3(%arg0: i32) -> (i32, i32) {
    %c0_i32 = arith.constant 0 : i32
    %c0_i32_0 = arith.constant 0 : i32
    return %arg0, %c0_i32 : i32, i32
  }
}

module attributes {stable_mosaic.version = 11 : i64} {
  func.func @kernel(%arg0: i32, %arg1: memref<128x72xbf16, #tpu.memory_space<vmem>>, %arg2: memref<72x128xbf16, #tpu.memory_space<vmem>>, %arg3: memref<128x128xf32, #tpu.memory_space<vmem>>, %arg4: memref<1x128xf32, #tpu.memory_space<vmem>>, %arg5: memref<1x128xf32, #tpu.memory_space<vmem>>) attributes {dimension_semantics = [#tpu.dimension_semantics<arbitrary>], iteration_bounds = array<i64: 1>, scalar_prefetch = 0 : i64, scratch_operands = 0 : i64, tpu.core_type = #tpu.core_type<tc>, window_params = [{transform_indices = @transform_0, window_bounds = array<i64: 128, 72>}, {pipeline_mode = #tpu.pipeline_mode<synchronous>, transform_indices = @transform_1, window_bounds = array<i64: 72, 128>}, {transform_indices = @transform_2, window_bounds = array<i64: 128, 128>}, {pipeline_mode = #tpu.pipeline_mode<synchronous>, transform_indices = @transform_3, window_bounds = array<i64: 1, 128>}, {pipeline_mode = #tpu.pipeline_mode<synchronous>, transform_indices = @transform_4, window_bounds = array<i64: 1, 128>}]} {
    %c0_i32 = arith.constant 0 : i32
    %0 = arith.cmpi eq, %arg0, %c0_i32 : i32
    %1 = arith.extui %0 : i1 to i32
    %c0_i32_0 = arith.constant 0 : i32
    %2 = arith.cmpi ne, %1, %c0_i32_0 : i32
    scf.if %2 {
      %cst_16 = arith.constant 0.000000e+00 : f32
      %18 = vector.broadcast %cst_16 : f32 to vector<1x128xf32>
      %c0_17 = arith.constant 0 : index
      %c0_18 = arith.constant 0 : index
      %19 = vector.load %arg4[%c0_17, %c0_18] : memref<1x128xf32, #tpu.memory_space<vmem>>, vector<1x128xf32>
      tpu.vector_store %arg4[%c0_17, %c0_18], %18 {strides = array<i32>} : memref<1x128xf32, #tpu.memory_space<vmem>>, vector<1x128xf32>,
      %cst_19 = arith.constant 0.000000e+00 : f32
      %20 = vector.broadcast %cst_19 : f32 to vector<1x128xf32>
      %c0_20 = arith.constant 0 : index
      %c0_21 = arith.constant 0 : index
      %21 = vector.load %arg5[%c0_20, %c0_21] : memref<1x128xf32, #tpu.memory_space<vmem>>, vector<1x128xf32>
      tpu.vector_store %arg5[%c0_20, %c0_21], %20 {strides = array<i32>} : memref<1x128xf32, #tpu.memory_space<vmem>>, vector<1x128xf32>,
    } else {
    }
    %c0 = arith.constant 0 : index
    %c0_1 = arith.constant 0 : index
    %3 = vector.load %arg1[%c0, %c0_1] : memref<128x72xbf16, #tpu.memory_space<vmem>>, vector<128x72xbf16>
    %c0_2 = arith.constant 0 : index
    %c0_3 = arith.constant 0 : index
    %4 = vector.load %arg2[%c0_2, %c0_3] : memref<72x128xbf16, #tpu.memory_space<vmem>>, vector<72x128xbf16>
    %cst = arith.constant dense<0.000000e+00> : vector<128x128xf32>
    %5 = tpu.matmul %3, %4, %cst {dimension_numbers = #tpu.dot_dimension_numbers<[1], [0], [0], [1], [0, 0, 1, 1], [], []>} : vector<128x72xbf16>, vector<72x128xbf16>, vector<128x128xf32> -> vector<128x128xf32>
    %c0_4 = arith.constant 0 : index
    %c0_5 = arith.constant 0 : index
    %6 = vector.load %arg3[%c0_4, %c0_5] : memref<128x128xf32, #tpu.memory_space<vmem>>, vector<128x128xf32>
    tpu.vector_store %arg3[%c0_4, %c0_5], %5 {strides = array<i32>} : memref<128x128xf32, #tpu.memory_space<vmem>>, vector<128x128xf32>,
    %c0_6 = arith.constant 0 : index
    %c0_7 = arith.constant 0 : index
    %7 = vector.load %arg4[%c0_6, %c0_7] : memref<1x128xf32, #tpu.memory_space<vmem>>, vector<1x128xf32>
    %cst_8 = arith.constant dense<0.000000e+00> : vector<128xf32>
    %8 = vector.multi_reduction <add>, %5, %cst_8 [0] : vector<128x128xf32> to vector<128xf32>
    %9 = vector.shape_cast %8 : vector<128xf32> to vector<1x128xf32>
    %10 = arith.addf %7, %9 : vector<1x128xf32>
    %c0_9 = arith.constant 0 : index
    %c0_10 = arith.constant 0 : index
    %11 = vector.load %arg4[%c0_9, %c0_10] : memref<1x128xf32, #tpu.memory_space<vmem>>, vector<1x128xf32>
    tpu.vector_store %arg4[%c0_9, %c0_10], %10 {strides = array<i32>} : memref<1x128xf32, #tpu.memory_space<vmem>>, vector<1x128xf32>,
    %c0_11 = arith.constant 0 : index
    %c0_12 = arith.constant 0 : index
    %12 = vector.load %arg5[%c0_11, %c0_12] : memref<1x128xf32, #tpu.memory_space<vmem>>, vector<1x128xf32>
    %13 = arith.mulf %5, %5 : vector<128x128xf32>
    %cst_13 = arith.constant dense<0.000000e+00> : vector<128xf32>
    %14 = vector.multi_reduction <add>, %13, %cst_13 [0] : vector<128x128xf32> to vector<128xf32>
    %15 = vector.shape_cast %14 : vector<128xf32> to vector<1x128xf32>
    %16 = arith.addf %12, %15 : vector<1x128xf32>
    %c0_14 = arith.constant 0 : index
    %c0_15 = arith.constant 0 : index
    %17 = vector.load %arg5[%c0_14, %c0_15] : memref<1x128xf32, #tpu.memory_space<vmem>>, vector<1x128xf32>
    tpu.vector_store %arg5[%c0_14, %c0_15], %16 {strides = array<i32>} : memref<1x128xf32, #tpu.memory_space<vmem>>, vector<1x128xf32>,
    return
  }
  func.func @transform_0(%arg0: i32) -> (i32, i32) {
    %c0_i32 = arith.constant 0 : i32
    %c0_i32_0 = arith.constant 0 : i32
    return %arg0, %c0_i32 : i32, i32
  }
  func.func @transform_1(%arg0: i32) -> (i32, i32) {
    %c0_i32 = arith.constant 0 : i32
    %c0_i32_0 = arith.constant 0 : i32
    %c0_i32_1 = arith.constant 0 : i32
    return %c0_i32, %c0_i32_0 : i32, i32
  }
  func.func @transform_2(%arg0: i32) -> (i32, i32) {
    %c0_i32 = arith.constant 0 : i32
    %c0_i32_0 = arith.constant 0 : i32
    return %arg0, %c0_i32 : i32, i32
  }
  func.func @transform_3(%arg0: i32) -> (i32, i32) {
    %c0_i32 = arith.constant 0 : i32
    %c0_i32_0 = arith.constant 0 : i32
    %c0_i32_1 = arith.constant 0 : i32
    return %c0_i32, %c0_i32_0 : i32, i32
  }
  func.func @transform_4(%arg0: i32) -> (i32, i32) {
    %c0_i32 = arith.constant 0 : i32
    %c0_i32_0 = arith.constant 0 : i32
    %c0_i32_1 = arith.constant 0 : i32
    return %c0_i32, %c0_i32_0 : i32, i32
  }
}

module attributes {stable_mosaic.version = 11 : i64} {
  func.func @kernel(%arg0: i32, %arg1: memref<128x128xf32, #tpu.memory_space<vmem>>, %arg2: memref<1x128xf32, #tpu.memory_space<vmem>>, %arg3: memref<1x128xf32, #tpu.memory_space<vmem>>, %arg4: memref<128x128xf32, #tpu.memory_space<vmem>>, %arg5: memref<1x128xf32, #tpu.memory_space<vmem>>, %arg6: memref<1x128xf32, #tpu.memory_space<vmem>>, %arg7: memref<128x128xf32, #tpu.memory_space<vmem>>) attributes {dimension_semantics = [#tpu.dimension_semantics<parallel>], iteration_bounds = array<i64: 1>, scalar_prefetch = 0 : i64, scratch_operands = 0 : i64, tpu.core_type = #tpu.core_type<tc>, window_params = [{transform_indices = @transform_0, window_bounds = array<i64: 128, 128>}, {pipeline_mode = #tpu.pipeline_mode<synchronous>, transform_indices = @transform_1, window_bounds = array<i64: 1, 128>}, {pipeline_mode = #tpu.pipeline_mode<synchronous>, transform_indices = @transform_2, window_bounds = array<i64: 1, 128>}, {transform_indices = @transform_3, window_bounds = array<i64: 128, 128>}, {pipeline_mode = #tpu.pipeline_mode<synchronous>, transform_indices = @transform_4, window_bounds = array<i64: 1, 128>}, {pipeline_mode = #tpu.pipeline_mode<synchronous>, transform_indices = @transform_5, window_bounds = array<i64: 1, 128>}, {transform_indices = @transform_6, window_bounds = array<i64: 128, 128>}]} {
    %c0 = arith.constant 0 : index
    %c0_0 = arith.constant 0 : index
    %0 = vector.load %arg1[%c0, %c0_0] : memref<128x128xf32, #tpu.memory_space<vmem>>, vector<128x128xf32>
    %c0_1 = arith.constant 0 : index
    %c0_2 = arith.constant 0 : index
    %1 = vector.load %arg2[%c0_1, %c0_2] : memref<1x128xf32, #tpu.memory_space<vmem>>, vector<1x128xf32>
    %2 = vector.broadcast %1 : vector<1x128xf32> to vector<128x128xf32>
    %3 = arith.mulf %0, %2 : vector<128x128xf32>
    %c0_3 = arith.constant 0 : index
    %c0_4 = arith.constant 0 : index
    %4 = vector.load %arg3[%c0_3, %c0_4] : memref<1x128xf32, #tpu.memory_space<vmem>>, vector<1x128xf32>
    %5 = vector.broadcast %4 : vector<1x128xf32> to vector<128x128xf32>
    %6 = arith.addf %3, %5 : vector<128x128xf32>
    %c0_5 = arith.constant 0 : index
    %c0_6 = arith.constant 0 : index
    %7 = vector.load %arg4[%c0_5, %c0_6] : memref<128x128xf32, #tpu.memory_space<vmem>>, vector<128x128xf32>
    %c0_7 = arith.constant 0 : index
    %c0_8 = arith.constant 0 : index
    %8 = vector.load %arg5[%c0_7, %c0_8] : memref<1x128xf32, #tpu.memory_space<vmem>>, vector<1x128xf32>
    %9 = vector.broadcast %8 : vector<1x128xf32> to vector<128x128xf32>
    %10 = arith.mulf %7, %9 : vector<128x128xf32>
    %c0_9 = arith.constant 0 : index
    %c0_10 = arith.constant 0 : index
    %11 = vector.load %arg6[%c0_9, %c0_10] : memref<1x128xf32, #tpu.memory_space<vmem>>, vector<1x128xf32>
    %12 = vector.broadcast %11 : vector<1x128xf32> to vector<128x128xf32>
    %13 = arith.addf %10, %12 : vector<128x128xf32>
    %14 = arith.addf %6, %13 : vector<128x128xf32>
    %cst = arith.constant 0.000000e+00 : f32
    %15 = vector.broadcast %cst : f32 to vector<128x128xf32>
    %16 = arith.maximumf %14, %15 : vector<128x128xf32>
    %c0_11 = arith.constant 0 : index
    %c0_12 = arith.constant 0 : index
    %17 = vector.load %arg7[%c0_11, %c0_12] : memref<128x128xf32, #tpu.memory_space<vmem>>, vector<128x128xf32>
    tpu.vector_store %arg7[%c0_11, %c0_12], %16 {strides = array<i32>} : memref<128x128xf32, #tpu.memory_space<vmem>>, vector<128x128xf32>,
    return
  }
  func.func @transform_0(%arg0: i32) -> (i32, i32) {
    %c0_i32 = arith.constant 0 : i32
    %c0_i32_0 = arith.constant 0 : i32
    return %arg0, %c0_i32 : i32, i32
  }
  func.func @transform_1(%arg0: i32) -> (i32, i32) {
    %c0_i32 = arith.constant 0 : i32
    %c0_i32_0 = arith.constant 0 : i32
    %c0_i32_1 = arith.constant 0 : i32
    return %c0_i32, %c0_i32_0 : i32, i32
  }
  func.func @transform_2(%arg0: i32) -> (i32, i32) {
    %c0_i32 = arith.constant 0 : i32
    %c0_i32_0 = arith.constant 0 : i32
    %c0_i32_1 = arith.constant 0 : i32
    return %c0_i32, %c0_i32_0 : i32, i32
  }
  func.func @transform_3(%arg0: i32) -> (i32, i32) {
    %c0_i32 = arith.constant 0 : i32
    %c0_i32_0 = arith.constant 0 : i32
    return %arg0, %c0_i32 : i32, i32
  }
  func.func @transform_4(%arg0: i32) -> (i32, i32) {
    %c0_i32 = arith.constant 0 : i32
    %c0_i32_0 = arith.constant 0 : i32
    %c0_i32_1 = arith.constant 0 : i32
    return %c0_i32, %c0_i32_0 : i32, i32
  }
  func.func @transform_5(%arg0: i32) -> (i32, i32) {
    %c0_i32 = arith.constant 0 : i32
    %c0_i32_0 = arith.constant 0 : i32
    %c0_i32_1 = arith.constant 0 : i32
    return %c0_i32, %c0_i32_0 : i32, i32
  }
  func.func @transform_6(%arg0: i32) -> (i32, i32) {
    %c0_i32 = arith.constant 0 : i32
    %c0_i32_0 = arith.constant 0 : i32
    return %arg0, %c0_i32 : i32, i32
  }
}

</mosaic_0001>

<bundles_post_ra>
// kernel: basicblock_forward.5
= control target key start
LH: loop header
LB: loop body
LE: loop exit
PB: predicated region body
PF: predicated region fallthrough
CT: control target
= control target key end

     0   :  { %s287_s0 = inlined_call_operand.vmem [shape: f32[128,128], index: 0, kind: input, shape index: {}]   ;;  %s288_s1 = inlined_call_operand.vmem [shape: f32[1,128], index: 1, kind: input, shape index: {}]   ;;  %s289_s2 = inlined_call_operand.vmem [shape: f32[1,128], index: 2, kind: input, shape index: {}]   ;;  %s290_s3 = inlined_call_operand.vmem [shape: bf16[128,128], index: 3, kind: output, shape index: {}]  }
   0x1   :  { %v14_v0 = vld [vmem:[%s287_s0] sm:$0xff]  ;;  %v15_v1 = vld [vmem:[%s287_s0 + $0x8] sm:$0xff]  ;;  %v16_v4 = vld [vmem:[%s287_s0 + $0x10] sm:$0xff] }
   0x2   :  { %v169_v2 = vld [vmem:[%s288_s1] ss:$0 sm:$0xff]  ;;  %v17_v5 = vld [vmem:[%s287_s0 + $0x18] sm:$0xff]  ;;  %v19_v11 = vld [vmem:[%s287_s0 + $0x28] sm:$0xff] }
   0x3   :  { %v203_v3 = vld [vmem:[%s289_s2] ss:$0 sm:$0xff]  ;;  %v34_v7 = vmul.f32 %v169_v2, %v14_v0  ;;  %v35_v8 = vmul.f32 %v169_v2, %v15_v1  ;;  %v36_v9 = vmul.f32 %v169_v2, %v16_v4  ;;  %v37_v10 = vmul.f32 %v169_v2, %v17_v5  ;;  %v20_v12 = vld [vmem:[%s287_s0 + $0x30] sm:$0xff]  ;;  %v21_v13 = vld [vmem:[%s287_s0 + $0x38] sm:$0xff] }
   0x4   :  { %v18_v6 = vld [vmem:[%s287_s0 + $0x20] sm:$0xff]  ;;  %v39_v15 = vmul.f32 %v169_v2, %v19_v11  ;;  %v40_v16 = vmul.f32 %v169_v2, %v20_v12  ;;  %v41_v17 = vmul.f32 %v169_v2, %v21_v13  ;;  %v23_v27 = vld [vmem:[%s287_s0 + $0x48] sm:$0xff]  ;;  %v24_v32 = vld [vmem:[%s287_s0 + $0x50] sm:$0xff] }
   0x5   :  { %v38_v14 = vmul.f32 %v169_v2, %v18_v6  ;;  %v54_v18 = vadd.f32 %v203_v3, %v34_v7  ;;  %v55_v19 = vadd.f32 %v203_v3, %v35_v8  ;;  %v56_v20 = vadd.f32 %v203_v3, %v36_v9  ;;  %v22_v26 = vld [vmem:[%s287_s0 + $0x40] sm:$0xff]  ;;  %v25_v33 = vld [vmem:[%s287_s0 + $0x58] sm:$0xff]  ;;  %v27_v39 = vld [vmem:[%s287_s0 + $0x68] sm:$0xff] }
   0x6   :  { %v57_v21 = vadd.f32 %v203_v3, %v37_v10  ;;  %v59_v23 = vadd.f32 %v203_v3, %v39_v15  ;;  %v60_v24 = vadd.f32 %v203_v3, %v40_v16  ;;  %v61_v25 = vadd.f32 %v203_v3, %v41_v17  ;;  %v26_v38 = vld [vmem:[%s287_s0 + $0x60] sm:$0xff]  ;;  %v28_v44 = vld [vmem:[%s287_s0 + $0x70] sm:$0xff]  ;;  %v29_v45 = vld [vmem:[%s287_s0 + $0x78] sm:$0xff] }
   0x7   :  { %v58_v22 = vadd.f32 %v203_v3, %v38_v14  ;;  %v70_v28 = vmax.f32 %v54_v18, 0.0  ;;  %v71_v29 = vmax.f32 %v55_v19, 0.0  ;;  %v72_v30 = vmax.f32 %v56_v20, 0.0 }
   0x8   :  { %v73_v31 = vmax.f32 %v57_v21, 0.0  ;;  %v75_v35 = vmax.f32 %v59_v23, 0.0  ;;  %v76_v36 = vmax.f32 %v60_v24, 0.0  ;;  %v77_v37 = vmax.f32 %v61_v25, 0.0 }
   0x9   :  { %v74_v34 = vmax.f32 %v58_v22, 0.0  ;;  %v125_v40 = vpack.c.bf16 %v71_v29, %v70_v28  ;;  %v42_v42 = vmul.f32 %v169_v2, %v22_v26  ;;  %v43_v43 = vmul.f32 %v169_v2, %v23_v27 }
   0xa   :  { %v130_v41 = vpack.c.bf16 %v73_v31, %v72_v30  ;;  %v140_v47 = vpack.c.bf16 %v77_v37, %v76_v36  ;;  %v44_v48 = vmul.f32 %v169_v2, %v24_v32  ;;  %v45_v49 = vmul.f32 %v169_v2, %v25_v33 }
   0xb   :  { %v135_v46 = vpack.c.bf16 %v75_v35, %v74_v34  ;;  %126 = vst [vmem:[%s290_s3] sm:$0xff] %v125_v40   ;;  %v62_v50 = vadd.f32 %v203_v3, %v42_v42  ;;  %v63_v51 = vadd.f32 %v203_v3, %v43_v43  ;;  %v46_v52 = vmul.f32 %v169_v2, %v26_v38 }
   0xc   :  { %v47_v53 = vmul.f32 %v169_v2, %v27_v39  ;;  %162 = vst [vmem:[%s290_s3 + $0x8] sm:$0xff] %v130_v41   ;;  %v64_v54 = vadd.f32 %v203_v3, %v44_v48  ;;  %v65_v55 = vadd.f32 %v203_v3, %v45_v49  ;;  %v48_v56 = vmul.f32 %v169_v2, %v28_v44 }
   0xd   :  { %v49_v57 = vmul.f32 %v169_v2, %v29_v45  ;;  %163 = vst [vmem:[%s290_s3 + $0x10] sm:$0xff] %v135_v46   ;;  %v78_v58 = vmax.f32 %v62_v50, 0.0  ;;  %v79_v59 = vmax.f32 %v63_v51, 0.0  ;;  %v66_v60 = vadd.f32 %v203_v3, %v46_v52 }
   0xe   :  { %v67_v61 = vadd.f32 %v203_v3, %v47_v53  ;;  %164 = vst [vmem:[%s290_s3 + $0x18] sm:$0xff] %v140_v47   ;;  %v80_v62 = vmax.f32 %v64_v54, 0.0  ;;  %v81_v63 = vmax.f32 %v65_v55, 0.0  ;;  %v68_v0 = vadd.f32 %v203_v3, %v48_v56 }
   0xf   :  { %v69_v1 = vadd.f32 %v203_v3, %v49_v57  ;;  %v145_v2 = vpack.c.bf16 %v79_v59, %v78_v58  ;;  %v82_v4 = vmax.f32 %v66_v60, 0.0 }
  0x10   :  { %v83_v5 = vmax.f32 %v67_v61, 0.0  ;;  %v150_v6 = vpack.c.bf16 %v81_v63, %v80_v62  ;;  %v84_v7 = vmax.f32 %v68_v0, 0.0 }
  0x11   :  { %v85_v8 = vmax.f32 %v69_v1, 0.0  ;;  %165 = vst [vmem:[%s290_s3 + $0x20] sm:$0xff] %v145_v2  }
  0x12   :  { %v155_v9 = vpack.c.bf16 %v83_v5, %v82_v4  ;;  %166 = vst [vmem:[%s290_s3 + $0x28] sm:$0xff] %v150_v6  }
  0x13   :  { %v160_v10 = vpack.c.bf16 %v85_v8, %v84_v7 }
  0x14   :  { %167 = vst [vmem:[%s290_s3 + $0x30] sm:$0xff] %v155_v9  }
  0x15   :  { %168 = vst [vmem:[%s290_s3 + $0x38] sm:$0xff] %v160_v10  }

// kernel: basicblock_forward.4
= control target key start
LH: loop header
LB: loop body
LE: loop exit
PB: predicated region body
PF: predicated region fallthrough
CT: control target
= control target key end

     0   :  { %vm133_vm0 = vcmask 1041408   ;;  %vm108_vm1 = vcmask 293888   ;;  %v530_v58 = vmov 0.0   ;;  %s882_s1 = inlined_call_operand.vmem [shape: bf16[36,128], index: 1, kind: input, shape index: {}]   ;;  %s883_s2 = inlined_call_operand.vmem [shape: bf16[36,128], index: 2, kind: input, shape index: {}]   ;;  %s884_s0 = inlined_call_operand.vmem [shape: bf16[128,36], index: 0, kind: input, shape index: {}]   ;;  %s885_s3 = inlined_call_operand.vmem [shape: f32[1,128], index: 3, kind: input, shape index: {}]   ;;  %s886_s4 = inlined_call_operand.vmem [shape: f32[128,128], index: 4, kind: output, shape index: {0}]   ;;  %s887_s5 = inlined_call_operand.vmem [shape: f32[128,128], index: 5, kind: output, shape index: {1}]   ;;  %s888_s7 = inlined_call_operand.vmem [shape: f32[1,128], index: 7, kind: output, shape index: {3}]   ;;  %s889_s9 = inlined_call_operand.vmem [shape: f32[1,128], index: 9, kind: output, shape index: {5}]   ;;  %s890_s6 = inlined_call_operand.vmem [shape: f32[1,128], index: 6, kind: output, shape index: {2}]   ;;  %s891_s8 = inlined_call_operand.vmem [shape: f32[1,128], index: 8, kind: output, shape index: {4}]  }
   0x1   :  { %v52_v0 = vld [vmem:[%s882_s1 + $0x10] sm:$0x3]  ;;  %v519_v8 = vld [vmem:[%s882_s1 + $0x8] sm:$0xff]  ;;  %v518_v10 = vld [vmem:[%s882_s1] sm:$0xff]  ;;  %30 = vst [vmem:[%s888_s7] sm:$0x1] %v530_v58 }
   0x2   :  { %v270_v1 = vld [vmem:[%s883_s2 + $0x10] sm:$0x3]  ;;  %v102_v2 = vunpack.c.l.b16 %v52_v0  ;;  %v521_v9 = vld [vmem:[%s883_s2 + $0x8] sm:$0xff]  ;;  %v520_v11 = vld [vmem:[%s883_s2] sm:$0xff]  ;;  %31 = vst [vmem:[%s889_s9] sm:$0x1] %v530_v58 }
   0x3   :  { %v284_v3 = vunpack.c.l.b16 %v270_v1  ;;  %v510_v12 = vld [vmem:[%s884_s0] sm:$0xff]  ;;  %v511_v14 = vld [vmem:[%s884_s0 + $0x8] sm:$0xff]  ;;  %v512_v16 = vld [vmem:[%s884_s0 + $0x10] sm:$0xff]  ;;  %28 = vst [vmem:[%s890_s6] sm:$0x1] %v530_v58 }
   0x4   :  { %v105_v4 = vpack.c.b16 %v102_v2, %v102_v2  ;;  %v514_v13 = vld [vmem:[%s884_s0 + $0x20] sm:$0xff]  ;;  %v515_v15 = vld [vmem:[%s884_s0 + $0x28] sm:$0xff]  ;;  %v516_v17 = vld [vmem:[%s884_s0 + $0x30] sm:$0xff]  ;;  %29 = vst [vmem:[%s891_s8] sm:$0x1] %v530_v58 }
   0x5   :  { %v287_v5 = vpack.c.b16 %v284_v3, %v284_v3  ;;  %v513_v18 = vld [vmem:[%s884_s0 + $0x18] sm:$0xff]  ;;  %v642_v20 = vld [vmem:[%s885_s3] ss:$0 sm:$0xff] }
   0x6   :  { %v135_v6 = vsel %vm133_vm0, %v105_v4, 0  ;;  %v517_v19 = vld [vmem:[%s884_s0 + $0x38] sm:$0xff] }
   0x7   :  { %v291_v7 = vsel %vm133_vm0, %v287_v5, 0  ;;  %142 = vmatpush.bf16.msra.mxu0 %v135_v6  ;;  %522 = vmatpush.bf16.msra.mxu2 %v135_v6 }
   0x8   :  { %298 = vmatpush.bf16.msra.mxu1 %v291_v7  ;;  %525 = vmatpush.bf16.msra.mxu3 %v291_v7 }
   0xb   :  { %143 = vmatpush.bf16.msra.mxu0 %v519_v8  ;;  %523 = vmatpush.bf16.msra.mxu2 %v519_v8 }
   0xc   :  { %299 = vmatpush.bf16.msra.mxu1 %v521_v9  ;;  %526 = vmatpush.bf16.msra.mxu3 %v521_v9 }
   0xf   :  { %144 = vmatpush.bf16.msra.mxu0 %v518_v10  ;;  %524 = vmatpush.bf16.msra.mxu2 %v518_v10 }
  0x10   :  { %300 = vmatpush.bf16.msra.mxu1 %v520_v11  ;;  %527 = vmatpush.bf16.msra.mxu3 %v520_v11 }
  0x12   :  { %486 = vmatmul.msk.bf16.vlgmr.msra.gmra.mxu0 %vm108_vm1, %v510_v12  ;;  %490 = vmatmul.msk.bf16.vlgmr.msra.gmra.mxu2 %vm108_vm1, %v514_v13 }
  0x13   :  { %502 = vmatmul.msk.bf16.vlgmr.msra.gmra.mxu1 %vm108_vm1, %v510_v12  ;;  %506 = vmatmul.msk.bf16.vlgmr.msra.gmra.mxu3 %vm108_vm1, %v514_v13 }
  0x22   :  { %487 = vmatmul.msk.bf16.gmra.mxu0 %vm108_vm1, %v511_v14  ;;  %491 = vmatmul.msk.bf16.gmra.mxu2 %vm108_vm1, %v515_v15 }
  0x23   :  { %503 = vmatmul.msk.bf16.gmra.mxu1 %vm108_vm1, %v511_v14  ;;  %507 = vmatmul.msk.bf16.gmra.mxu3 %vm108_vm1, %v515_v15 }
  0x32   :  { %488 = vmatmul.msk.bf16.gmra.mxu0 %vm108_vm1, %v512_v16  ;;  %492 = vmatmul.msk.bf16.gmra.mxu2 %vm108_vm1, %v516_v17 }
  0x33   :  { %504 = vmatmul.msk.bf16.gmra.mxu1 %vm108_vm1, %v512_v16  ;;  %508 = vmatmul.msk.bf16.gmra.mxu3 %vm108_vm1, %v516_v17 }
  0x42   :  { %489 = vmatmul.msk.bf16.gmra.mxu0 %vm108_vm1, %v513_v18  ;;  %493 = vmatmul.msk.bf16.gmra.mxu2 %vm108_vm1, %v517_v19 }
  0x43   :  { %505 = vmatmul.msk.bf16.gmra.mxu1 %vm108_vm1, %v513_v18  ;;  %509 = vmatmul.msk.bf16.gmra.mxu3 %vm108_vm1, %v517_v19 }
  0x8f   :  { %v644_v21 = vpop.f32.mrf.mxu0 }
  0x90   :  { %v302_v22 = vpop.f32.mrf.mxu1  ;;  %186 = vst [vmem:[%s886_s4] sm:$0xff] %v644_v21  ;;  %v227_v56 = vmul.f32 %v644_v21, %v644_v21 }
  0x91   :  { %v651_v23 = vadd.f32 %v642_v20, %v302_v22 }
  0x93   :  { %342 = vst [vmem:[%s887_s5] sm:$0xff] %v651_v23  ;;  %v383_v59 = vmul.f32 %v651_v23, %v651_v23 }
  0x95   :  { %v657_v25 = vpop.f32.mrf.mxu2 }
  0x96   :  { %v322_v24 = vpop.f32.mrf.mxu3  ;;  %194 = vst [vmem:[%s886_s4 + $0x40] sm:$0xff] %v657_v25 }
  0x97   :  { %v148_v26 = vpop.f32.mrf.mxu0  ;;  %v660_v28 = vadd.f32 %v642_v20, %v322_v24 }
  0x98   :  { %v304_v27 = vpop.f32.mrf.mxu1  ;;  %187 = vst [vmem:[%s886_s4 + $0x8] sm:$0xff] %v148_v26  ;;  %v228_v54 = vmul.f32 %v148_v26, %v148_v26  ;;  %v203_v60 = vadd.f32 %v148_v26, %v644_v21 }
  0x99   :  { %v305_v29 = vadd.f32 %v642_v20, %v304_v27  ;;  %350 = vst [vmem:[%s887_s5 + $0x40] sm:$0xff] %v660_v28 }
  0x9a   :  { %v243_v61 = vadd.f32 %v228_v54, %v227_v56 }
  0x9b   :  { %343 = vst [vmem:[%s887_s5 + $0x8] sm:$0xff] %v305_v29  ;;  %v384_v55 = vmul.f32 %v305_v29, %v305_v29  ;;  %v359_v0 = vadd.f32 %v305_v29, %v651_v23 }
  0x9d   :  { %v677_v31 = vpop.f32.mrf.mxu2  ;;  %v399_v1 = vadd.f32 %v384_v55, %v383_v59  ;;  %v391_v59 = vmul.f32 %v660_v28, %v660_v28 }
  0x9e   :  { %v324_v30 = vpop.f32.mrf.mxu3  ;;  %195 = vst [vmem:[%s886_s4 + $0x48] sm:$0xff] %v677_v31 }
  0x9f   :  { %v151_v32 = vpop.f32.mrf.mxu0  ;;  %v680_v34 = vadd.f32 %v642_v20, %v324_v30 }
  0xa0   :  { %v307_v33 = vpop.f32.mrf.mxu1  ;;  %188 = vst [vmem:[%s886_s4 + $0x10] sm:$0xff] %v151_v32  ;;  %v229_v57 = vmul.f32 %v151_v32, %v151_v32  ;;  %v204_v2 = vadd.f32 %v203_v60, %v151_v32  ;;  %v236_v60 = vmul.f32 %v677_v31, %v677_v31 }
  0xa1   :  { %v690_v35 = vadd.f32 %v642_v20, %v307_v33  ;;  %351 = vst [vmem:[%s887_s5 + $0x48] sm:$0xff] %v680_v34 }
  0xa2   :  { %v244_v5 = vadd.f32 %v243_v61, %v229_v57 }
  0xa3   :  { %344 = vst [vmem:[%s887_s5 + $0x10] sm:$0xff] %v690_v35  ;;  %v385_v62 = vmul.f32 %v690_v35, %v690_v35  ;;  %v360_v11 = vadd.f32 %v359_v0, %v690_v35 }
  0xa5   :  { %v700_v37 = vpop.f32.mrf.mxu2  ;;  %v400_v14 = vadd.f32 %v399_v1, %v385_v62 }
  0xa6   :  { %v327_v36 = vpop.f32.mrf.mxu3  ;;  %196 = vst [vmem:[%s886_s4 + $0x50] sm:$0xff] %v700_v37  ;;  %v237_v1 = vmul.f32 %v700_v37, %v700_v37 }
  0xa7   :  { %v153_v38 = vpop.f32.mrf.mxu0  ;;  %v703_v40 = vadd.f32 %v642_v20, %v327_v36 }
  0xa8   :  { %v309_v39 = vpop.f32.mrf.mxu1  ;;  %189 = vst [vmem:[%s886_s4 + $0x18] sm:$0xff] %v153_v38  ;;  %v230_v63 = vmul.f32 %v153_v38, %v153_v38  ;;  %v205_v12 = vadd.f32 %v204_v2, %v153_v38 }
  0xa9   :  { %v310_v41 = vadd.f32 %v642_v20, %v309_v39  ;;  %352 = vst [vmem:[%s887_s5 + $0x50] sm:$0xff] %v703_v40 }
  0xaa   :  { %v245_v15 = vadd.f32 %v244_v5, %v230_v63 }
  0xab   :  { %345 = vst [vmem:[%s887_s5 + $0x18] sm:$0xff] %v310_v41  ;;  %v386_v6 = vmul.f32 %v310_v41, %v310_v41  ;;  %v361_v18 = vadd.f32 %v360_v11, %v310_v41 }
  0xad   :  { %v720_v43 = vpop.f32.mrf.mxu2  ;;  %v401_v21 = vadd.f32 %v400_v14, %v386_v6 }
  0xae   :  { %v329_v42 = vpop.f32.mrf.mxu3  ;;  %197 = vst [vmem:[%s886_s4 + $0x58] sm:$0xff] %v720_v43 }
  0xaf   :  { %v156_v44 = vpop.f32.mrf.mxu0  ;;  %v723_v46 = vadd.f32 %v642_v20, %v329_v42 }
  0xb0   :  { %v312_v45 = vpop.f32.mrf.mxu1  ;;  %190 = vst [vmem:[%s886_s4 + $0x20] sm:$0xff] %v156_v44  ;;  %v231_v7 = vmul.f32 %v156_v44, %v156_v44  ;;  %v206_v19 = vadd.f32 %v205_v12, %v156_v44 }
  0xb1   :  { %v313_v47 = vadd.f32 %v642_v20, %v312_v45  ;;  %353 = vst [vmem:[%s887_s5 + $0x58] sm:$0xff] %v723_v46 }
  0xb2   :  { %v246_v22 = vadd.f32 %v245_v15, %v231_v7 }
  0xb3   :  { %346 = vst [vmem:[%s887_s5 + $0x20] sm:$0xff] %v313_v47  ;;  %v387_v16 = vmul.f32 %v313_v47, %v313_v47  ;;  %v362_v26 = vadd.f32 %v361_v18, %v313_v47 }
  0xb5   :  { %v740_v49 = vpop.f32.mrf.mxu2  ;;  %v402_v29 = vadd.f32 %v401_v21, %v387_v16 }
  0xb6   :  { %v332_v48 = vpop.f32.mrf.mxu3  ;;  %198 = vst [vmem:[%s886_s4 + $0x60] sm:$0xff] %v740_v49  ;;  %v239_v14 = vmul.f32 %v740_v49, %v740_v49 }
  0xb7   :  { %v158_v50 = vpop.f32.mrf.mxu0  ;;  %v743_v52 = vadd.f32 %v642_v20, %v332_v48 }
  0xb8   :  { %v314_v51 = vpop.f32.mrf.mxu1  ;;  %191 = vst [vmem:[%s886_s4 + $0x28] sm:$0xff] %v158_v50  ;;  %v232_v17 = vmul.f32 %v158_v50, %v158_v50  ;;  %v207_v27 = vadd.f32 %v206_v19, %v158_v50 }
  0xb9   :  { %v315_v53 = vadd.f32 %v642_v20, %v314_v51  ;;  %354 = vst [vmem:[%s887_s5 + $0x60] sm:$0xff] %v743_v52 }
  0xba   :  { %v247_v30 = vadd.f32 %v246_v22, %v232_v17 }
  0xbb   :  { %347 = vst [vmem:[%s887_s5 + $0x28] sm:$0xff] %v315_v53  ;;  %v388_v23 = vmul.f32 %v315_v53, %v315_v53  ;;  %v363_v33 = vadd.f32 %v362_v26, %v315_v53  ;;  %v235_v53 = vmul.f32 %v657_v25, %v657_v25 }
  0xbd   :  { %v777_v4 = vpop.f32.mrf.mxu2  ;;  %v403_v39 = vadd.f32 %v402_v29, %v388_v23 }
  0xbe   :  { %v334_v3 = vpop.f32.mrf.mxu3  ;;  %199 = vst [vmem:[%s886_s4 + $0x68] sm:$0xff] %v777_v4 }
  0xbf   :  { %v161_v8 = vpop.f32.mrf.mxu0  ;;  %v783_v10 = vadd.f32 %v642_v20, %v334_v3 }
  0xc0   :  { %v317_v9 = vpop.f32.mrf.mxu1  ;;  %192 = vst [vmem:[%s886_s4 + $0x30] sm:$0xff] %v161_v8  ;;  %v233_v24 = vmul.f32 %v161_v8, %v161_v8  ;;  %v208_v35 = vadd.f32 %v207_v27, %v161_v8 }
  0xc1   :  { %v318_v13 = vadd.f32 %v642_v20, %v317_v9  ;;  %355 = vst [vmem:[%s887_s5 + $0x68] sm:$0xff] %v783_v10  ;;  %v396_v23 = vmul.f32 %v783_v10, %v783_v10 }
  0xc2   :  { %v248_v41 = vadd.f32 %v247_v30, %v233_v24 }
  0xc3   :  { %348 = vst [vmem:[%s887_s5 + $0x30] sm:$0xff] %v318_v13  ;;  %v389_v32 = vmul.f32 %v318_v13, %v318_v13  ;;  %v364_v48 = vadd.f32 %v363_v33, %v318_v13  ;;  %v394_v13 = vmul.f32 %v723_v46, %v723_v46 }
  0xc5   :  { %v181_v38 = vpop.f32.mrf.mxu2  ;;  %v404_v54 = vadd.f32 %v403_v39, %v389_v32 }
  0xc6   :  { %v337_v36 = vpop.f32.mrf.mxu3  ;;  %200 = vst [vmem:[%s886_s4 + $0x70] sm:$0xff] %v181_v38  ;;  %v241_v24 = vmul.f32 %v181_v38, %v181_v38 }
  0xc7   :  { %v163_v42 = vpop.f32.mrf.mxu0  ;;  %v338_v45 = vadd.f32 %v642_v20, %v337_v36 }
  0xc8   :  { %v319_v44 = vpop.f32.mrf.mxu1  ;;  %193 = vst [vmem:[%s886_s4 + $0x38] sm:$0xff] %v163_v42  ;;  %v209_v47 = vadd.f32 %v208_v35, %v163_v42  ;;  %v234_v50 = vmul.f32 %v163_v42, %v163_v42 }
  0xc9   :  { %v320_v51 = vadd.f32 %v642_v20, %v319_v44  ;;  %356 = vst [vmem:[%s887_s5 + $0x70] sm:$0xff] %v338_v45  ;;  %v397_v29 = vmul.f32 %v338_v45, %v338_v45 }
  0xca   :  { %v210_v55 = vadd.f32 %v209_v47, %v657_v25  ;;  %v249_v56 = vadd.f32 %v248_v41, %v234_v50  ;;  %v392_v25 = vmul.f32 %v680_v34, %v680_v34 }
  0xcb   :  { %349 = vst [vmem:[%s887_s5 + $0x38] sm:$0xff] %v320_v51  ;;  %v365_v57 = vadd.f32 %v364_v48, %v320_v51  ;;  %v390_v58 = vmul.f32 %v320_v51, %v320_v51 }
  0xcc   :  { %v211_v61 = vadd.f32 %v210_v55, %v677_v31  ;;  %v250_v62 = vadd.f32 %v249_v56, %v235_v53  ;;  %v393_v31 = vmul.f32 %v703_v40, %v703_v40 }
  0xcd   :  { %v366_v63 = vadd.f32 %v365_v57, %v660_v28  ;;  %v405_v0 = vadd.f32 %v404_v54, %v390_v58  ;;  %v183_v8 = vpop.f32.mrf.mxu2  ;;  %v238_v28 = vmul.f32 %v720_v43, %v720_v43 }
  0xce   :  { %v212_v2 = vadd.f32 %v211_v61, %v700_v37  ;;  %v251_v3 = vadd.f32 %v250_v62, %v236_v60  ;;  %v339_v7 = vpop.f32.mrf.mxu3  ;;  %201 = vst [vmem:[%s886_s4 + $0x78] sm:$0xff] %v183_v8  ;;  %v242_v30 = vmul.f32 %v183_v8, %v183_v8  ;;  %v202_v61 = vld [vmem:[%s890_s6] sm:$0x1] }
  0xcf   :  { %v367_v5 = vadd.f32 %v366_v63, %v680_v34  ;;  %v406_v6 = vadd.f32 %v405_v0, %v391_v59  ;;  %v340_v9 = vadd.f32 %v642_v20, %v339_v7 }
  0xd0   :  { %v252_v11 = vadd.f32 %v251_v3, %v237_v1  ;;  %v213_v34 = vadd.f32 %v212_v2, %v720_v43  ;;  %v240_v43 = vmul.f32 %v777_v4, %v777_v4  ;;  %v358_v1 = vld [vmem:[%s888_s7] sm:$0x1] }
  0xd1   :  { %v368_v37 = vadd.f32 %v367_v5, %v703_v40  ;;  %v407_v12 = vadd.f32 %v406_v6, %v392_v25  ;;  %357 = vst [vmem:[%s887_s5 + $0x78] sm:$0xff] %v340_v9  ;;  %v395_v40 = vmul.f32 %v743_v52, %v743_v52  ;;  %v226_v2 = vld [vmem:[%s891_s8] sm:$0x1] }
  0xd2   :  { %v214_v16 = vadd.f32 %v213_v34, %v740_v49  ;;  %v253_v17 = vadd.f32 %v252_v11, %v238_v28 }
  0xd3   :  { %v408_v20 = vadd.f32 %v407_v12, %v393_v31  ;;  %v369_v15 = vadd.f32 %v368_v37, %v723_v46 }
  0xd4   :  { %v215_v21 = vadd.f32 %v214_v16, %v777_v4  ;;  %v254_v22 = vadd.f32 %v253_v17, %v239_v14 }
  0xd5   :  { %v370_v18 = vadd.f32 %v369_v15, %v743_v52  ;;  %v409_v19 = vadd.f32 %v408_v20, %v394_v13  ;;  %v398_v52 = vmul.f32 %v340_v9, %v340_v9 }
  0xd6   :  { %v216_v26 = vadd.f32 %v215_v21, %v181_v38  ;;  %v255_v27 = vadd.f32 %v254_v22, %v240_v43 }
  0xd7   :  { %v371_v46 = vadd.f32 %v370_v18, %v783_v10  ;;  %v410_v49 = vadd.f32 %v409_v19, %v395_v40 }
  0xd8   :  { %v256_v35 = vadd.f32 %v255_v27, %v241_v24  ;;  %v217_v36 = vadd.f32 %v216_v26, %v183_v8  ;;  %v382_v8 = vld [vmem:[%s889_s9] sm:$0x1] }
  0xd9   :  { %v372_v32 = vadd.f32 %v371_v46, %v338_v45  ;;  %v411_v33 = vadd.f32 %v410_v49, %v396_v23 }
  0xda   :  { %v218_v4 = vrot.slane %v217_v36, 4  ;;  %v257_v42 = vadd.f32 %v256_v35, %v242_v30 }
  0xdb   :  { %v412_v39 = vadd.f32 %v411_v33, %v397_v29  ;;  %v373_v41 = vadd.f32 %v372_v32, %v340_v9 }
  0xdc   :  { %v219_v47 = vadd.f32 %v218_v4, %v217_v36  ;;  %v258_v50 = vrot.slane %v257_v42, 4 }
  0xdd   :  { %v374_v44 = vrot.slane %v373_v41, 4  ;;  %v413_v48 = vadd.f32 %v412_v39, %v398_v52 }
  0xde   :  { %v220_v53 = vrot.slane %v219_v47, 2  ;;  %v259_v38 = vadd.f32 %v258_v50, %v257_v42 }
  0xdf   :  { %v375_v51 = vadd.f32 %v374_v44, %v373_v41  ;;  %v414_v10 = vrot.slane %v413_v48, 4 }
  0xe0   :  { %v221_v56 = vadd.f32 %v220_v53, %v219_v47  ;;  %v260_v45 = vrot.slane %v259_v38, 2 }
  0xe1   :  { %v376_v54 = vrot.slane %v375_v51, 2  ;;  %v415_v55 = vadd.f32 %v414_v10, %v413_v48 }
  0xe2   :  { %v222_v59 = vrot.slane %v221_v56, 1  ;;  %v261_v60 = vadd.f32 %v260_v45, %v259_v38 }
  0xe3   :  { %v377_v57 = vadd.f32 %v376_v54, %v375_v51  ;;  %v416_v58 = vrot.slane %v415_v55, 2 }
  0xe4   :  { %v223_v0 = vadd.f32 %v222_v59, %v221_v56  ;;  %v262_v25 = vrot.slane %v261_v60, 1 }
  0xe5   :  { %v378_v62 = vrot.slane %v377_v57, 1  ;;  %v417_v63 = vadd.f32 %v416_v58, %v415_v55 }
  0xe6   :  { %v224_v6 = vadd.f32 %v223_v0, %v202_v61  ;;  %v263_v7 = vadd.f32 %v262_v25, %v261_v60 }
  0xe7   :  { %v379_v3 = vadd.f32 %v378_v62, %v377_v57  ;;  %v418_v5 = vrot.slane %v417_v63, 1 }
  0xe8   :  { %225 = vst [vmem:[%s890_s6] sm:$0x1] %v224_v6  ;;  %v264_v9 = vadd.f32 %v263_v7, %v226_v2 }
  0xe9   :  { %v380_v31 = vadd.f32 %v379_v3, %v358_v1  ;;  %v419_v28 = vadd.f32 %v418_v5, %v417_v63 }
  0xea   :  { %265 = vst [vmem:[%s891_s8] sm:$0x1] %v264_v9 }
  0xeb   :  { %381 = vst [vmem:[%s888_s7] sm:$0x1] %v380_v31  ;;  %v420_v11 = vadd.f32 %v419_v28, %v382_v8 }
  0xed   :  { %421 = vst [vmem:[%s889_s9] sm:$0x1] %v420_v11 }

// kernel: basicblock_forward.6
= control target key start
LH: loop header
LB: loop body
LE: loop exit
PB: predicated region body
PF: predicated region fallthrough
CT: control target
= control target key end

     0   :  { %vm138_vm0 = vcmask 1043456   ;;  %vm113_vm1 = vcmask 588800   ;;  %v367_v27 = vmov 0.0   ;;  %s512_s1 = inlined_call_operand.vmem [shape: bf16[72,128], index: 1, kind: input, shape index: {}]   ;;  %s513_s0 = inlined_call_operand.vmem [shape: bf16[128,72], index: 0, kind: input, shape index: {}]   ;;  %s514_s2 = inlined_call_operand.vmem [shape: f32[128,128], index: 2, kind: output, shape index: {0}]   ;;  %s515_s3 = inlined_call_operand.vmem [shape: f32[1,128], index: 3, kind: output, shape index: {1}]   ;;  %s516_s4 = inlined_call_operand.vmem [shape: f32[1,128], index: 4, kind: output, shape index: {2}]  }
   0x1   :  { %v45_v0 = vld [vmem:[%s512_s1 + $0x20] sm:$0xf]  ;;  %v350_v4 = vld [vmem:[%s512_s1 + $0x18] sm:$0xff]  ;;  %v349_v5 = vld [vmem:[%s512_s1 + $0x10] sm:$0xff]  ;;  %19 = vst [vmem:[%s515_s3] sm:$0x1] %v367_v27 }
   0x2   :  { %v103_v1 = vunpack.c.l.b16 %v45_v0  ;;  %v348_v6 = vld [vmem:[%s512_s1 + $0x8] sm:$0xff]  ;;  %v347_v7 = vld [vmem:[%s512_s1] sm:$0xff]  ;;  %v341_v9 = vld [vmem:[%s513_s0 + $0x10] sm:$0xff]  ;;  %20 = vst [vmem:[%s516_s4] sm:$0x1] %v367_v27 }
   0x3   :  { %v339_v8 = vld [vmem:[%s513_s0] sm:$0xff]  ;;  %v345_v11 = vld [vmem:[%s513_s0 + $0x30] sm:$0xff]  ;;  %v340_v12 = vld [vmem:[%s513_s0 + $0x8] sm:$0xff] }
   0x4   :  { %v108_v2 = vpack.c.b16 %v103_v1, %v103_v1  ;;  %v343_v10 = vld [vmem:[%s513_s0 + $0x20] sm:$0xff]  ;;  %v342_v13 = vld [vmem:[%s513_s0 + $0x18] sm:$0xff]  ;;  %v344_v14 = vld [vmem:[%s513_s0 + $0x28] sm:$0xff] }
   0x5   :  { %v346_v15 = vld [vmem:[%s513_s0 + $0x38] sm:$0xff] }
   0x6   :  { %v140_v3 = vsel %vm138_vm0, %v108_v2, 0 }
   0x7   :  { %145 = vmatpush.bf16.msra.mxu0 %v140_v3  ;;  %351 = vmatpush.bf16.msra.mxu1 %v140_v3 }
   0x8   :  { %352 = vmatpush.bf16.msra.mxu2 %v140_v3  ;;  %353 = vmatpush.bf16.msra.mxu3 %v140_v3 }
   0x9   :  { %v231_v27 = vld [vmem:[%s516_s4] sm:$0x1] }
   0xb   :  { %146 = vmatpush.bf16.msra.mxu0 %v350_v4  ;;  %354 = vmatpush.bf16.msra.mxu1 %v350_v4 }
   0xc   :  { %355 = vmatpush.bf16.msra.mxu2 %v350_v4  ;;  %356 = vmatpush.bf16.msra.mxu3 %v350_v4 }
   0xf   :  { %147 = vmatpush.bf16.msra.mxu0 %v349_v5  ;;  %357 = vmatpush.bf16.msra.mxu1 %v349_v5 }
  0x10   :  { %358 = vmatpush.bf16.msra.mxu2 %v349_v5  ;;  %359 = vmatpush.bf16.msra.mxu3 %v349_v5 }
  0x13   :  { %148 = vmatpush.bf16.msra.mxu0 %v348_v6  ;;  %360 = vmatpush.bf16.msra.mxu1 %v348_v6 }
  0x14   :  { %361 = vmatpush.bf16.msra.mxu2 %v348_v6  ;;  %362 = vmatpush.bf16.msra.mxu3 %v348_v6 }
  0x17   :  { %149 = vmatpush.bf16.msra.mxu0 %v347_v7  ;;  %363 = vmatpush.bf16.msra.mxu1 %v347_v7 }
  0x18   :  { %364 = vmatpush.bf16.msra.mxu2 %v347_v7  ;;  %365 = vmatpush.bf16.msra.mxu3 %v347_v7 }
  0x1a   :  { %331 = vmatmul.msk.bf16.vlgmr.msra.gmra.mxu0 %vm113_vm1, %v339_v8  ;;  %333 = vmatmul.msk.bf16.vlgmr.msra.gmra.mxu1 %vm113_vm1, %v341_v9 }
  0x1b   :  { %335 = vmatmul.msk.bf16.vlgmr.msra.gmra.mxu2 %vm113_vm1, %v343_v10  ;;  %337 = vmatmul.msk.bf16.vlgmr.msra.gmra.mxu3 %vm113_vm1, %v345_v11 }
  0x2a   :  { %332 = vmatmul.msk.bf16.gmra.mxu0 %vm113_vm1, %v340_v12  ;;  %334 = vmatmul.msk.bf16.gmra.mxu1 %vm113_vm1, %v342_v13 }
  0x2b   :  { %336 = vmatmul.msk.bf16.gmra.mxu2 %vm113_vm1, %v344_v14  ;;  %338 = vmatmul.msk.bf16.gmra.mxu3 %vm113_vm1, %v346_v15 }
  0x97   :  { %v151_v16 = vpop.f32.mrf.mxu0  ;;  %v161_v17 = vpop.f32.mrf.mxu1 }
  0x98   :  { %191 = vst [vmem:[%s514_s2] sm:$0xff] %v151_v16  ;;  %v232_v28 = vmul.f32 %v151_v16, %v151_v16  ;;  %v236_v40 = vmul.f32 %v161_v17, %v161_v17 }
  0x99   :  { %195 = vst [vmem:[%s514_s2 + $0x20] sm:$0xff] %v161_v17 }
  0x9e   :  { %v171_v18 = vpop.f32.mrf.mxu2  ;;  %v446_v19 = vpop.f32.mrf.mxu3 }
  0x9f   :  { %v153_v20 = vpop.f32.mrf.mxu0  ;;  %v163_v21 = vpop.f32.mrf.mxu1  ;;  %199 = vst [vmem:[%s514_s2 + $0x40] sm:$0xff] %v171_v18  ;;  %v240_v54 = vmul.f32 %v171_v18, %v171_v18  ;;  %v244_v2 = vmul.f32 %v446_v19, %v446_v19 }
  0xa0   :  { %192 = vst [vmem:[%s514_s2 + $0x8] sm:$0xff] %v153_v20  ;;  %v233_v26 = vmul.f32 %v153_v20, %v153_v20  ;;  %v208_v29 = vadd.f32 %v153_v20, %v151_v16  ;;  %v237_v43 = vmul.f32 %v163_v21, %v163_v21 }
  0xa1   :  { %196 = vst [vmem:[%s514_s2 + $0x28] sm:$0xff] %v163_v21 }
  0xa2   :  { %203 = vst [vmem:[%s514_s2 + $0x60] sm:$0xff] %v446_v19  ;;  %v248_v31 = vadd.f32 %v233_v26, %v232_v28 }
  0xa6   :  { %v173_v22 = vpop.f32.mrf.mxu2  ;;  %v183_v23 = vpop.f32.mrf.mxu3 }
  0xa7   :  { %v156_v24 = vpop.f32.mrf.mxu0  ;;  %v166_v25 = vpop.f32.mrf.mxu1  ;;  %200 = vst [vmem:[%s514_s2 + $0x48] sm:$0xff] %v173_v22  ;;  %v241_v57 = vmul.f32 %v173_v22, %v173_v22  ;;  %v245_v5 = vmul.f32 %v183_v23, %v183_v23 }
  0xa8   :  { %193 = vst [vmem:[%s514_s2 + $0x10] sm:$0xff] %v156_v24  ;;  %v234_v30 = vmul.f32 %v156_v24, %v156_v24  ;;  %v209_v32 = vadd.f32 %v208_v29, %v156_v24  ;;  %v238_v46 = vmul.f32 %v166_v25, %v166_v25 }
  0xa9   :  { %197 = vst [vmem:[%s514_s2 + $0x30] sm:$0xff] %v166_v25 }
  0xaa   :  { %204 = vst [vmem:[%s514_s2 + $0x68] sm:$0xff] %v183_v23  ;;  %v249_v37 = vadd.f32 %v248_v31, %v234_v30 }
  0xae   :  { %v176_v33 = vpop.f32.mrf.mxu2  ;;  %v186_v34 = vpop.f32.mrf.mxu3 }
  0xaf   :  { %v158_v35 = vpop.f32.mrf.mxu0  ;;  %v168_v36 = vpop.f32.mrf.mxu1  ;;  %201 = vst [vmem:[%s514_s2 + $0x50] sm:$0xff] %v176_v33  ;;  %v242_v61 = vmul.f32 %v176_v33, %v176_v33  ;;  %v246_v9 = vmul.f32 %v186_v34, %v186_v34 }
  0xb0   :  { %194 = vst [vmem:[%s514_s2 + $0x18] sm:$0xff] %v158_v35  ;;  %v210_v38 = vadd.f32 %v209_v32, %v158_v35  ;;  %v235_v39 = vmul.f32 %v158_v35, %v158_v35  ;;  %v239_v52 = vmul.f32 %v168_v36, %v168_v36 }
  0xb1   :  { %198 = vst [vmem:[%s514_s2 + $0x38] sm:$0xff] %v168_v36 }
  0xb2   :  { %v211_v41 = vadd.f32 %v210_v38, %v161_v17  ;;  %v250_v42 = vadd.f32 %v249_v37, %v235_v39  ;;  %205 = vst [vmem:[%s514_s2 + $0x70] sm:$0xff] %v186_v34 }
  0xb4   :  { %v251_v44 = vadd.f32 %v250_v42, %v236_v40  ;;  %v212_v45 = vadd.f32 %v211_v41, %v163_v21 }
  0xb6   :  { %v213_v47 = vadd.f32 %v212_v45, %v166_v25  ;;  %v252_v48 = vadd.f32 %v251_v44, %v237_v43  ;;  %v178_v49 = vpop.f32.mrf.mxu2  ;;  %v188_v50 = vpop.f32.mrf.mxu3 }
  0xb7   :  { %202 = vst [vmem:[%s514_s2 + $0x58] sm:$0xff] %v178_v49  ;;  %v243_v1 = vmul.f32 %v178_v49, %v178_v49  ;;  %v247_v13 = vmul.f32 %v188_v50, %v188_v50 }
  0xb8   :  { %v214_v51 = vadd.f32 %v213_v47, %v168_v36  ;;  %v253_v53 = vadd.f32 %v252_v48, %v238_v46  ;;  %206 = vst [vmem:[%s514_s2 + $0x78] sm:$0xff] %v188_v50 }
  0xba   :  { %v215_v55 = vadd.f32 %v214_v51, %v171_v18  ;;  %v254_v56 = vadd.f32 %v253_v53, %v239_v52 }
  0xbc   :  { %v255_v58 = vadd.f32 %v254_v56, %v240_v54  ;;  %v216_v59 = vadd.f32 %v215_v55, %v173_v22 }
  0xbe   :  { %v217_v60 = vadd.f32 %v216_v59, %v176_v33  ;;  %v256_v62 = vadd.f32 %v255_v58, %v241_v57 }
  0xc0   :  { %v257_v63 = vadd.f32 %v256_v62, %v242_v61  ;;  %v218_v0 = vadd.f32 %v217_v60, %v178_v49 }
  0xc2   :  { %v219_v3 = vadd.f32 %v218_v0, %v446_v19  ;;  %v258_v4 = vadd.f32 %v257_v63, %v243_v1 }
  0xc4   :  { %v259_v6 = vadd.f32 %v258_v4, %v244_v2  ;;  %v220_v7 = vadd.f32 %v219_v3, %v183_v23  ;;  %v207_v23 = vld [vmem:[%s515_s3] sm:$0x1] }
  0xc6   :  { %v221_v8 = vadd.f32 %v220_v7, %v186_v34  ;;  %v260_v10 = vadd.f32 %v259_v6, %v245_v5 }
  0xc8   :  { %v261_v11 = vadd.f32 %v260_v10, %v246_v9  ;;  %v222_v12 = vadd.f32 %v221_v8, %v188_v50 }
  0xca   :  { %v223_v14 = vrot.slane %v222_v12, 4  ;;  %v262_v15 = vadd.f32 %v261_v11, %v247_v13 }
  0xcc   :  { %v224_v16 = vadd.f32 %v223_v14, %v222_v12  ;;  %v263_v17 = vrot.slane %v262_v15, 4 }
  0xce   :  { %v225_v18 = vrot.slane %v224_v16, 2  ;;  %v264_v20 = vadd.f32 %v263_v17, %v262_v15 }
  0xd0   :  { %v226_v21 = vadd.f32 %v225_v18, %v224_v16  ;;  %v265_v22 = vrot.slane %v264_v20, 2 }
  0xd2   :  { %v227_v24 = vrot.slane %v226_v21, 1  ;;  %v266_v19 = vadd.f32 %v265_v22, %v264_v20 }
  0xd4   :  { %v228_v25 = vadd.f32 %v227_v24, %v226_v21  ;;  %v267_v26 = vrot.slane %v266_v19, 1 }
  0xd6   :  { %v229_v28 = vadd.f32 %v228_v25, %v207_v23  ;;  %v268_v29 = vadd.f32 %v267_v26, %v266_v19 }
  0xd8   :  { %230 = vst [vmem:[%s515_s3] sm:$0x1] %v229_v28  ;;  %v269_v30 = vadd.f32 %v268_v29, %v231_v27 }
  0xda   :  { %270 = vst [vmem:[%s516_s4] sm:$0x1] %v269_v30 }

// kernel: basicblock_forward.7
= control target key start
LH: loop header
LB: loop body
LE: loop exit
PB: predicated region body
PF: predicated region fallthrough
CT: control target
= control target key end

     0   :  { %s454_s0 = inlined_call_operand.vmem [shape: f32[128,128], index: 0, kind: input, shape index: {}]   ;;  %s455_s1 = inlined_call_operand.vmem [shape: f32[1,128], index: 1, kind: input, shape index: {}]   ;;  %s456_s2 = inlined_call_operand.vmem [shape: f32[1,128], index: 2, kind: input, shape index: {}]   ;;  %s457_s3 = inlined_call_operand.vmem [shape: f32[128,128], index: 3, kind: input, shape index: {}]   ;;  %s458_s4 = inlined_call_operand.vmem [shape: f32[1,128], index: 4, kind: input, shape index: {}]   ;;  %s459_s5 = inlined_call_operand.vmem [shape: f32[1,128], index: 5, kind: input, shape index: {}]   ;;  %s460_s6 = inlined_call_operand.vmem [shape: f32[128,128], index: 6, kind: output, shape index: {}]  }
   0x1   :  { %v23_v0 = vld [vmem:[%s454_s0] sm:$0xff]  ;;  %v24_v7 = vld [vmem:[%s454_s0 + $0x8] sm:$0xff]  ;;  %v25_v13 = vld [vmem:[%s454_s0 + $0x10] sm:$0xff] }
   0x2   :  { %v232_v1 = vld [vmem:[%s455_s1] ss:$0 sm:$0xff]  ;;  %v80_v8 = vld [vmem:[%s457_s3 + $0x8] sm:$0xff]  ;;  %v81_v14 = vld [vmem:[%s457_s3 + $0x10] sm:$0xff] }
   0x3   :  { %v237_v2 = vld [vmem:[%s456_s2] ss:$0 sm:$0xff]  ;;  %v43_v4 = vmul.f32 %v232_v1, %v23_v0  ;;  %v44_v11 = vmul.f32 %v232_v1, %v24_v7  ;;  %v26_v15 = vld [vmem:[%s454_s0 + $0x18] sm:$0xff]  ;;  %v45_v16 = vmul.f32 %v232_v1, %v25_v13  ;;  %v28_v26 = vld [vmem:[%s454_s0 + $0x28] sm:$0xff] }
   0x4   :  { %v79_v3 = vld [vmem:[%s457_s3] sm:$0xff]  ;;  %v46_v18 = vmul.f32 %v232_v1, %v26_v15  ;;  %v82_v19 = vld [vmem:[%s457_s3 + $0x18] sm:$0xff]  ;;  %v84_v27 = vld [vmem:[%s457_s3 + $0x28] sm:$0xff]  ;;  %v48_v39 = vmul.f32 %v232_v1, %v28_v26 }
   0x5   :  { %v246_v5 = vld [vmem:[%s458_s4] ss:$0 sm:$0xff]  ;;  %v63_v9 = vadd.f32 %v237_v2, %v43_v4  ;;  %v64_v23 = vadd.f32 %v237_v2, %v44_v11  ;;  %v65_v28 = vadd.f32 %v237_v2, %v45_v16  ;;  %v29_v36 = vld [vmem:[%s454_s0 + $0x30] sm:$0xff]  ;;  %v30_v42 = vld [vmem:[%s454_s0 + $0x38] sm:$0xff] }
   0x6   :  { %v251_v6 = vld [vmem:[%s459_s5] ss:$0 sm:$0xff]  ;;  %v99_v10 = vmul.f32 %v246_v5, %v79_v3  ;;  %v100_v12 = vmul.f32 %v246_v5, %v80_v8  ;;  %v101_v17 = vmul.f32 %v246_v5, %v81_v14  ;;  %v102_v25 = vmul.f32 %v246_v5, %v82_v19  ;;  %v85_v41 = vld [vmem:[%s457_s3 + $0x30] sm:$0xff]  ;;  %v86_v47 = vld [vmem:[%s457_s3 + $0x38] sm:$0xff] }
   0x7   :  { %v27_v20 = vld [vmem:[%s454_s0 + $0x20] sm:$0xff]  ;;  %v66_v30 = vadd.f32 %v237_v2, %v46_v18  ;;  %v104_v40 = vmul.f32 %v246_v5, %v84_v27  ;;  %v68_v50 = vadd.f32 %v237_v2, %v48_v39  ;;  %v49_v52 = vmul.f32 %v232_v1, %v29_v36  ;;  %v32_v58 = vld [vmem:[%s454_s0 + $0x48] sm:$0xff]  ;;  %v33_v0 = vld [vmem:[%s454_s0 + $0x50] sm:$0xff] }
   0x8   :  { %v83_v21 = vld [vmem:[%s457_s3 + $0x20] sm:$0xff]  ;;  %v119_v22 = vadd.f32 %v251_v6, %v99_v10  ;;  %v120_v24 = vadd.f32 %v251_v6, %v100_v12  ;;  %v121_v29 = vadd.f32 %v251_v6, %v101_v17  ;;  %v47_v31 = vmul.f32 %v232_v1, %v27_v20  ;;  %v88_v63 = vld [vmem:[%s457_s3 + $0x48] sm:$0xff]  ;;  %v34_v10 = vld [vmem:[%s454_s0 + $0x58] sm:$0xff] }
   0x9   :  { %v122_v34 = vadd.f32 %v251_v6, %v102_v25  ;;  %v103_v35 = vmul.f32 %v246_v5, %v83_v21  ;;  %v31_v48 = vld [vmem:[%s454_s0 + $0x40] sm:$0xff]  ;;  %v124_v51 = vadd.f32 %v251_v6, %v104_v40  ;;  %v105_v56 = vmul.f32 %v246_v5, %v85_v41  ;;  %v90_v19 = vld [vmem:[%s457_s3 + $0x58] sm:$0xff]  ;;  %v37_v36 = vld [vmem:[%s454_s0 + $0x70] sm:$0xff] }
   0xa   :  { %v135_v32 = vadd.f32 %v119_v22, %v63_v9  ;;  %v136_v33 = vadd.f32 %v120_v24, %v64_v23  ;;  %v137_v37 = vadd.f32 %v121_v29, %v65_v28  ;;  %v67_v38 = vadd.f32 %v237_v2, %v47_v31  ;;  %v87_v53 = vld [vmem:[%s457_s3 + $0x40] sm:$0xff]  ;;  %v89_v9 = vld [vmem:[%s457_s3 + $0x50] sm:$0xff]  ;;  %v92_v31 = vld [vmem:[%s457_s3 + $0x68] sm:$0xff] }
   0xb   :  { %v138_v45 = vadd.f32 %v122_v34, %v66_v30  ;;  %v123_v46 = vadd.f32 %v251_v6, %v103_v35  ;;  %v50_v57 = vmul.f32 %v232_v1, %v30_v42  ;;  %v140_v59 = vadd.f32 %v124_v51, %v68_v50  ;;  %v35_v24 = vld [vmem:[%s454_s0 + $0x60] sm:$0xff]  ;;  %v36_v30 = vld [vmem:[%s454_s0 + $0x68] sm:$0xff]  ;;  %v94_v51 = vld [vmem:[%s457_s3 + $0x78] sm:$0xff] }
   0xc   :  { %v151_v43 = vmax.f32 %v135_v32, 0.0  ;;  %v152_v44 = vmax.f32 %v136_v33, 0.0  ;;  %v153_v49 = vmax.f32 %v137_v37, 0.0  ;;  %v69_v60 = vadd.f32 %v237_v2, %v49_v52  ;;  %v91_v25 = vld [vmem:[%s457_s3 + $0x60] sm:$0xff] }
   0xd   :  { %v154_v54 = vmax.f32 %v138_v45, 0.0  ;;  %v139_v55 = vadd.f32 %v123_v46, %v67_v38  ;;  %v106_v61 = vmul.f32 %v246_v5, %v86_v47  ;;  %v51_v62 = vmul.f32 %v232_v1, %v31_v48  ;;  %v93_v45 = vld [vmem:[%s457_s3 + $0x70] sm:$0xff]  ;;  %v38_v46 = vld [vmem:[%s454_s0 + $0x78] sm:$0xff] }
   0xe   :  { %167 = vst [vmem:[%s460_s6] sm:$0xff] %v151_v43  ;;  %v125_v4 = vadd.f32 %v251_v6, %v105_v56  ;;  %v70_v7 = vadd.f32 %v237_v2, %v50_v57  ;;  %v107_v8 = vmul.f32 %v246_v5, %v87_v53  ;;  %v156_v11 = vmax.f32 %v140_v59, 0.0 }
   0xf   :  { %168 = vst [vmem:[%s460_s6 + $0x8] sm:$0xff] %v152_v44  ;;  %v155_v3 = vmax.f32 %v139_v55, 0.0  ;;  %v126_v12 = vadd.f32 %v251_v6, %v106_v61  ;;  %v71_v13 = vadd.f32 %v237_v2, %v51_v62  ;;  %v52_v14 = vmul.f32 %v232_v1, %v32_v58 }
  0x10   :  { %169 = vst [vmem:[%s460_s6 + $0x10] sm:$0xff] %v153_v49  ;;  %v141_v15 = vadd.f32 %v125_v4, %v69_v60  ;;  %v127_v16 = vadd.f32 %v251_v6, %v107_v8  ;;  %v108_v17 = vmul.f32 %v246_v5, %v88_v63  ;;  %v53_v18 = vmul.f32 %v232_v1, %v33_v0 }
  0x11   :  { %170 = vst [vmem:[%s460_s6 + $0x18] sm:$0xff] %v154_v54  ;;  %v142_v20 = vadd.f32 %v126_v12, %v70_v7  ;;  %v72_v21 = vadd.f32 %v237_v2, %v52_v14  ;;  %v109_v22 = vmul.f32 %v246_v5, %v89_v9  ;;  %v54_v23 = vmul.f32 %v232_v1, %v34_v10 }
  0x12   :  { %171 = vst [vmem:[%s460_s6 + $0x20] sm:$0xff] %v155_v3  ;;  %v157_v26 = vmax.f32 %v141_v15, 0.0  ;;  %v143_v27 = vadd.f32 %v127_v16, %v71_v13  ;;  %v128_v28 = vadd.f32 %v251_v6, %v108_v17  ;;  %v73_v29 = vadd.f32 %v237_v2, %v53_v18 }
  0x13   :  { %172 = vst [vmem:[%s460_s6 + $0x28] sm:$0xff] %v156_v11  ;;  %v158_v32 = vmax.f32 %v142_v20, 0.0  ;;  %v129_v33 = vadd.f32 %v251_v6, %v109_v22  ;;  %v74_v34 = vadd.f32 %v237_v2, %v54_v23  ;;  %v110_v35 = vmul.f32 %v246_v5, %v90_v19 }
  0x14   :  { %173 = vst [vmem:[%s460_s6 + $0x30] sm:$0xff] %v157_v26  ;;  %v159_v37 = vmax.f32 %v143_v27, 0.0  ;;  %v144_v38 = vadd.f32 %v128_v28, %v72_v21  ;;  %v55_v39 = vmul.f32 %v232_v1, %v35_v24  ;;  %v111_v40 = vmul.f32 %v246_v5, %v91_v25 }
  0x15   :  { %174 = vst [vmem:[%s460_s6 + $0x38] sm:$0xff] %v158_v32  ;;  %v145_v41 = vadd.f32 %v129_v33, %v73_v29  ;;  %v130_v42 = vadd.f32 %v251_v6, %v110_v35  ;;  %v56_v43 = vmul.f32 %v232_v1, %v36_v30  ;;  %v112_v44 = vmul.f32 %v246_v5, %v92_v31 }
  0x16   :  { %175 = vst [vmem:[%s460_s6 + $0x40] sm:$0xff] %v159_v37  ;;  %v160_v47 = vmax.f32 %v144_v38, 0.0  ;;  %v75_v48 = vadd.f32 %v237_v2, %v55_v39  ;;  %v131_v49 = vadd.f32 %v251_v6, %v111_v40  ;;  %v57_v50 = vmul.f32 %v232_v1, %v37_v36 }
  0x17   :  { %v161_v52 = vmax.f32 %v145_v41, 0.0  ;;  %v146_v53 = vadd.f32 %v130_v42, %v74_v34  ;;  %v76_v54 = vadd.f32 %v237_v2, %v56_v43  ;;  %v132_v55 = vadd.f32 %v251_v6, %v112_v44 }
  0x18   :  { %176 = vst [vmem:[%s460_s6 + $0x48] sm:$0xff] %v160_v47  ;;  %v147_v56 = vadd.f32 %v131_v49, %v75_v48  ;;  %v77_v57 = vadd.f32 %v237_v2, %v57_v50  ;;  %v113_v58 = vmul.f32 %v246_v5, %v93_v45  ;;  %v58_v59 = vmul.f32 %v232_v1, %v38_v46 }
  0x19   :  { %177 = vst [vmem:[%s460_s6 + $0x50] sm:$0xff] %v161_v52  ;;  %v162_v60 = vmax.f32 %v146_v53, 0.0  ;;  %v148_v61 = vadd.f32 %v132_v55, %v76_v54  ;;  %v114_v62 = vmul.f32 %v246_v5, %v94_v51 }
  0x1a   :  { %v163_v63 = vmax.f32 %v147_v56, 0.0  ;;  %v133_v0 = vadd.f32 %v251_v6, %v113_v58  ;;  %v78_v3 = vadd.f32 %v237_v2, %v58_v59 }
  0x1b   :  { %178 = vst [vmem:[%s460_s6 + $0x58] sm:$0xff] %v162_v60  ;;  %v164_v4 = vmax.f32 %v148_v61, 0.0  ;;  %v134_v1 = vadd.f32 %v251_v6, %v114_v62 }
  0x1c   :  { %179 = vst [vmem:[%s460_s6 + $0x60] sm:$0xff] %v163_v63  ;;  %v149_v7 = vadd.f32 %v133_v0, %v77_v57 }
  0x1d   :  { %180 = vst [vmem:[%s460_s6 + $0x68] sm:$0xff] %v164_v4  ;;  %v150_v5 = vadd.f32 %v134_v1, %v78_v3 }
  0x1e   :  { %v165_v8 = vmax.f32 %v149_v7, 0.0 }
  0x1f   :  { %v166_v9 = vmax.f32 %v150_v5, 0.0 }
  0x20   :  { %181 = vst [vmem:[%s460_s6 + $0x70] sm:$0xff] %v165_v8 }
  0x21   :  { %182 = vst [vmem:[%s460_s6 + $0x78] sm:$0xff] %v166_v9 }

</bundles_post_ra>
